<compile_context>
chip_gen: v5e
topology: v5e:2x2
jax: 0.10.0
libtpu: 0.0.40
codegen_flags: <defaults>
</compile_context>

<pallas_src>
import jax
import jax.numpy as jnp
from jax.experimental import pallas as pl
from jax.experimental.pallas import tpu as pltpu


_LANE = 128          # lane width: pad fan-out dims to this
_BF16_SUBLANE = 16   # bf16 packs 2 rows/sublane -> batch tiles multiple of 16


def _round_up(x, m):
    return ((x + m - 1) // m) * m


def _cdiv(a, b):
    return (a + b - 1) // b


# ---------------------------------------------------------------------------
# Kernel: full 6-layer MLP for one batch tile.
# refs = (w1, b1, w2, b2, ..., w6, b6, o_ref)
# ---------------------------------------------------------------------------
def _mlp_kernel(x_ref, *refs):
    o_ref = refs[-1]
    wb_refs = refs[:-1]
    n_layers = len(wb_refs) // 2

    h = x_ref[...].astype(jnp.bfloat16)       # (tile_b, in_dim) cast in-kernel
    for l in range(n_layers):
        w = wb_refs[2 * l][...]                # (fan_in[_pad], fan_out_pad) bf16
        b = wb_refs[2 * l + 1][...]            # (1, fan_out_pad) f32
        # MXU matmul in bf16, f32 accumulate; bias-add / ReLU on the VPU in f32.
        y = jnp.dot(h, w, preferred_element_type=jnp.float32) + b
        if l < n_layers - 1:
            h = jnp.maximum(y, 0.0).astype(jnp.bfloat16)
        else:
            h = y                              # final layer: no ReLU
    o_ref[...] = h.astype(o_ref.dtype)


# ---------------------------------------------------------------------------
# One-time parameter preprocessing (call once, reuse every forward)
# ---------------------------------------------------------------------------
def prepare_params(params):
    """Pad fan-out dims to lane multiples (128), cast weights to bf16.

    params: list of (W, b) with W shaped (in_features, out_features)
            (i.e. PyTorch weight.T) and b shaped (out_features,) or
            (1, out_features), float32.

    The first layer's fan-in is left unpadded so x can be read from HBM
    without feature padding.  Zero padding is exact: padded weight rows/cols
    and bias lanes are 0, so padded activation lanes stay 0 through every
    bias-add/ReLU and contribute nothing to real outputs.
    """
    in_dim = params[0][0].shape[0]
    out_dim = params[-1][0].shape[1]
    flat = []
    prev_out_pad = in_dim                      # layer-0 fan_in stays unpadded
    for (w, b) in params:
        fi, fo = w.shape
        b2 = jnp.reshape(b, (1, -1)).astype(jnp.float32)
        pfi = prev_out_pad                     # matches previous layer's pad
        pfo = _round_up(fo, _LANE)
        w_p = jnp.zeros((pfi, pfo), jnp.bfloat16).at[:fi, :fo].set(
            w.astype(jnp.bfloat16))
        b_p = jnp.zeros((1, pfo), jnp.float32).at[:, :fo].set(b2)
        flat.extend([w_p, b_p])
        prev_out_pad = pfo
    return {"flat": flat, "in_dim": in_dim, "out_dim": out_dim,
            "out_pad": prev_out_pad}


def _detect_num_tensorcores():
    # v7x exposes 2 TensorCores per chip; v5e/v6e have 1.
    try:
        kind = jax.devices()[0].device_kind.lower()
        if "v7" in kind or "7x" in kind:
            return 2
    except Exception:
        pass
    return 1


# ---------------------------------------------------------------------------
# Forward wrapper
# ---------------------------------------------------------------------------
def model_super_forward(x, prepared, *, tile_b=512, out_dtype=jnp.bfloat16,
                        num_cores=None):
    """Forward pass of ModelSuper.

    x:        (B, in_dim) float32 (cast to bf16 inside the kernel)
    prepared: output of prepare_params() (padded/cast weights, done once)
    """
    B, in_dim = x.shape
    assert in_dim == prepared["in_dim"]
    out_dim = prepared["out_dim"]
    out_pad = prepared["out_pad"]
    flat = prepared["flat"]

    if num_cores is None:
        num_cores = _detect_num_tensorcores()

    # ---- batch tile: balance tiles to minimize padding waste, keep them a
    # multiple of 16 (bf16 sublane packing); on a 2-TC chip round the grid
    # step count up to an even number so both cores get equal work.
    n_steps = max(1, _cdiv(B, tile_b))
    if num_cores > 1 and B >= num_cores * _LANE:
        n_steps = _round_up(n_steps, num_cores)
    tile = _round_up(_cdiv(B, n_steps), _BF16_SUBLANE)
    padded_B = n_steps * tile

    # ---- only the batch dim is padded; one fused pad op, no feature padding,
    # no dtype-cast copy in the wrapper.
    x_p = x if padded_B == B else jnp.pad(x, ((0, padded_B - B), (0, 0)))

    x_spec = pl.BlockSpec((tile, in_dim), lambda i: (i, 0))
    # Constant (0,0) index_map -> every weight/bias is VMEM-resident across
    # the whole grid (~1.5 MB bf16; double-buffered copies still fit easily).
    param_specs = [pl.BlockSpec(p.shape, lambda i: (0, 0)) for p in flat]
    out_spec = pl.BlockSpec((tile, out_pad), lambda i: (i, 0))

    out_padded = pl.pallas_call(
        _mlp_kernel,
        out_shape=jax.ShapeDtypeStruct((padded_B, out_pad), out_dtype),
        grid_spec=pltpu.PrefetchScalarGridSpec(
            num_scalar_prefetch=0,
            grid=(n_steps,),
            in_specs=[x_spec] + param_specs,
            out_specs=out_spec,
        ),
        compiler_params=pltpu.CompilerParams(
            dimension_semantics=("parallel",),
            vmem_limit_bytes=32 * 1024 * 1024,
        ),
    )(x_p, *flat)

    return out_padded[:B, :out_dim]


# ---------------------------------------------------------------------------
# Init + references
# ---------------------------------------------------------------------------
def init_params(key, in_dim, out_dim):
    """Deterministic init matching the nn.Linear shapes of ModelSuper."""
    dims = [in_dim, 1024, 512, 256, 128, 64, out_dim]
    params = []
    for i in range(len(dims) - 1):
        fan_in, fan_out = dims[i], dims[i + 1]
        key, kw, kb = jax.random.split(key, 3)
        bound = 1.0 / jnp.sqrt(fan_in)
        # Stored as (in_features, out_features) — i.e. PyTorch weight.T
        w = jax.random.uniform(kw, (fan_in, fan_out), jnp.float32,
                               minval=-bound, maxval=bound)
        b = jax.random.uniform(kb, (1, fan_out), jnp.float32,
                               minval=-bound, maxval=bound)
        params.append((w, b))
    return params


def reference_forward_f32(x, params):
    """Pure-JAX f32 reference of the same forward pass."""
    h = x
    for (w, b) in params[:-1]:
        h = jnp.maximum(h @ w + jnp.reshape(b, (1, -1)), 0.0)
    w, b = params[-1]
    return h @ w + jnp.reshape(b, (1, -1))


def reference_forward_bf16(x, params):
    """Reference matching the kernel numerics: bf16 matmuls, f32 accumulate."""
    h = x.astype(jnp.bfloat16)
    n = len(params)
    out = None
    for l, (w, b) in enumerate(params):
        y = jnp.dot(h, w.astype(jnp.bfloat16),
                    preferred_element_type=jnp.float32)
        y = y + jnp.reshape(b, (1, -1))
        if l < n - 1:
            h = jnp.maximum(y, 0.0).astype(jnp.bfloat16)
        else:
            out = y
    return out


if __name__ == "__main__":
    in_dim, out_dim = 32, 10
    batch = 16

    key = jax.random.PRNGKey(0)
    key, kx = jax.random.split(key)
    x = jax.random.normal(kx, (batch, in_dim), jnp.float32)

    params = init_params(key, in_dim, out_dim)
    prepared = prepare_params(params)          # one-time padding/casting

    out = model_super_forward(x, prepared, tile_b=512)
    out = jax.block_until_ready(out)
    assert out.shape == (batch, out_dim)

    out_f32 = out.astype(jnp.float32)
    ref_bf16 = reference_forward_bf16(x, params)
    ref_f32 = reference_forward_f32(x, params)
    assert jnp.allclose(out_f32, ref_bf16, atol=2e-2, rtol=2e-2), \
        "mismatch vs bf16-matmul reference"
    assert jnp.allclose(out_f32, ref_f32, atol=5e-2, rtol=5e-2), \
        "mismatch vs f32 reference"

    print("KERNEL_OK")
</pallas_src>

<mosaic_0001>
module attributes {stable_mosaic.version = 11 : i64} {
  func.func @_mlp_kernel(%arg0: i32, %arg1: memref<16x32xf32, #tpu.memory_space<vmem>>, %arg2: memref<32x1024xbf16, #tpu.memory_space<vmem>>, %arg3: memref<1x1024xf32, #tpu.memory_space<vmem>>, %arg4: memref<1024x512xbf16, #tpu.memory_space<vmem>>, %arg5: memref<1x512xf32, #tpu.memory_space<vmem>>, %arg6: memref<512x256xbf16, #tpu.memory_space<vmem>>, %arg7: memref<1x256xf32, #tpu.memory_space<vmem>>, %arg8: memref<256x128xbf16, #tpu.memory_space<vmem>>, %arg9: memref<1x128xf32, #tpu.memory_space<vmem>>, %arg10: memref<128x128xbf16, #tpu.memory_space<vmem>>, %arg11: memref<1x128xf32, #tpu.memory_space<vmem>>, %arg12: memref<128x128xbf16, #tpu.memory_space<vmem>>, %arg13: memref<1x128xf32, #tpu.memory_space<vmem>>, %arg14: memref<16x128xbf16, #tpu.memory_space<vmem>>) attributes {dimension_semantics = [#tpu.dimension_semantics<parallel>], iteration_bounds = array<i64: 1>, scalar_prefetch = 0 : i64, scratch_operands = 0 : i64, tpu.core_type = #tpu.core_type<tc>, window_params = [{transform_indices = @transform_0, window_bounds = array<i64: 16, 32>}, {pipeline_mode = #tpu.pipeline_mode<synchronous>, transform_indices = @transform_1, window_bounds = array<i64: 32, 1024>}, {pipeline_mode = #tpu.pipeline_mode<synchronous>, transform_indices = @transform_2, window_bounds = array<i64: 1, 1024>}, {pipeline_mode = #tpu.pipeline_mode<synchronous>, transform_indices = @transform_3, window_bounds = array<i64: 1024, 512>}, {pipeline_mode = #tpu.pipeline_mode<synchronous>, transform_indices = @transform_4, window_bounds = array<i64: 1, 512>}, {pipeline_mode = #tpu.pipeline_mode<synchronous>, transform_indices = @transform_5, window_bounds = array<i64: 512, 256>}, {pipeline_mode = #tpu.pipeline_mode<synchronous>, transform_indices = @transform_6, window_bounds = array<i64: 1, 256>}, {pipeline_mode = #tpu.pipeline_mode<synchronous>, transform_indices = @transform_7, window_bounds = array<i64: 256, 128>}, {pipeline_mode = #tpu.pipeline_mode<synchronous>, transform_indices = @transform_8, window_bounds = array<i64: 1, 128>}, {pipeline_mode = #tpu.pipeline_mode<synchronous>, transform_indices = @transform_9, window_bounds = array<i64: 128, 128>}, {pipeline_mode = #tpu.pipeline_mode<synchronous>, transform_indices = @transform_10, window_bounds = array<i64: 1, 128>}, {pipeline_mode = #tpu.pipeline_mode<synchronous>, transform_indices = @transform_11, window_bounds = array<i64: 128, 128>}, {pipeline_mode = #tpu.pipeline_mode<synchronous>, transform_indices = @transform_12, window_bounds = array<i64: 1, 128>}, {transform_indices = @transform_13, window_bounds = array<i64: 16, 128>}]} {
    %c0 = arith.constant 0 : index
    %c0_0 = arith.constant 0 : index
    %0 = vector.load %arg1[%c0, %c0_0] : memref<16x32xf32, #tpu.memory_space<vmem>>, vector<16x32xf32>
    %1 = arith.truncf %0 : vector<16x32xf32> to vector<16x32xbf16>
    %c0_1 = arith.constant 0 : index
    %c0_2 = arith.constant 0 : index
    %2 = vector.load %arg2[%c0_1, %c0_2] : memref<32x1024xbf16, #tpu.memory_space<vmem>>, vector<32x1024xbf16>
    %c0_3 = arith.constant 0 : index
    %c0_4 = arith.constant 0 : index
    %3 = vector.load %arg3[%c0_3, %c0_4] : memref<1x1024xf32, #tpu.memory_space<vmem>>, vector<1x1024xf32>
    %cst = arith.constant dense<0.000000e+00> : vector<16x1024xf32>
    %4 = tpu.matmul %1, %2, %cst {dimension_numbers = #tpu.dot_dimension_numbers<[1], [0], [0], [1], [0, 0, 1, 1], [], []>} : vector<16x32xbf16>, vector<32x1024xbf16>, vector<16x1024xf32> -> vector<16x1024xf32>
    %5 = vector.broadcast %3 : vector<1x1024xf32> to vector<16x1024xf32>
    %6 = arith.addf %4, %5 : vector<16x1024xf32>
    %cst_5 = arith.constant 0.000000e+00 : f32
    %7 = vector.broadcast %cst_5 : f32 to vector<16x1024xf32>
    %8 = arith.maximumf %6, %7 : vector<16x1024xf32>
    %9 = arith.truncf %8 : vector<16x1024xf32> to vector<16x1024xbf16>
    %c0_6 = arith.constant 0 : index
    %c0_7 = arith.constant 0 : index
    %10 = vector.load %arg4[%c0_6, %c0_7] : memref<1024x512xbf16, #tpu.memory_space<vmem>>, vector<1024x512xbf16>
    %c0_8 = arith.constant 0 : index
    %c0_9 = arith.constant 0 : index
    %11 = vector.load %arg5[%c0_8, %c0_9] : memref<1x512xf32, #tpu.memory_space<vmem>>, vector<1x512xf32>
    %cst_10 = arith.constant dense<0.000000e+00> : vector<16x512xf32>
    %12 = tpu.matmul %9, %10, %cst_10 {dimension_numbers = #tpu.dot_dimension_numbers<[1], [0], [0], [1], [0, 0, 1, 1], [], []>} : vector<16x1024xbf16>, vector<1024x512xbf16>, vector<16x512xf32> -> vector<16x512xf32>
    %13 = vector.broadcast %11 : vector<1x512xf32> to vector<16x512xf32>
    %14 = arith.addf %12, %13 : vector<16x512xf32>
    %cst_11 = arith.constant 0.000000e+00 : f32
    %15 = vector.broadcast %cst_11 : f32 to vector<16x512xf32>
    %16 = arith.maximumf %14, %15 : vector<16x512xf32>
    %17 = arith.truncf %16 : vector<16x512xf32> to vector<16x512xbf16>
    %c0_12 = arith.constant 0 : index
    %c0_13 = arith.constant 0 : index
    %18 = vector.load %arg6[%c0_12, %c0_13] : memref<512x256xbf16, #tpu.memory_space<vmem>>, vector<512x256xbf16>
    %c0_14 = arith.constant 0 : index
    %c0_15 = arith.constant 0 : index
    %19 = vector.load %arg7[%c0_14, %c0_15] : memref<1x256xf32, #tpu.memory_space<vmem>>, vector<1x256xf32>
    %cst_16 = arith.constant dense<0.000000e+00> : vector<16x256xf32>
    %20 = tpu.matmul %17, %18, %cst_16 {dimension_numbers = #tpu.dot_dimension_numbers<[1], [0], [0], [1], [0, 0, 1, 1], [], []>} : vector<16x512xbf16>, vector<512x256xbf16>, vector<16x256xf32> -> vector<16x256xf32>
    %21 = vector.broadcast %19 : vector<1x256xf32> to vector<16x256xf32>
    %22 = arith.addf %20, %21 : vector<16x256xf32>
    %cst_17 = arith.constant 0.000000e+00 : f32
    %23 = vector.broadcast %cst_17 : f32 to vector<16x256xf32>
    %24 = arith.maximumf %22, %23 : vector<16x256xf32>
    %25 = arith.truncf %24 : vector<16x256xf32> to vector<16x256xbf16>
    %c0_18 = arith.constant 0 : index
    %c0_19 = arith.constant 0 : index
    %26 = vector.load %arg8[%c0_18, %c0_19] : memref<256x128xbf16, #tpu.memory_space<vmem>>, vector<256x128xbf16>
    %c0_20 = arith.constant 0 : index
    %c0_21 = arith.constant 0 : index
    %27 = vector.load %arg9[%c0_20, %c0_21] : memref<1x128xf32, #tpu.memory_space<vmem>>, vector<1x128xf32>
    %cst_22 = arith.constant dense<0.000000e+00> : vector<16x128xf32>
    %28 = tpu.matmul %25, %26, %cst_22 {dimension_numbers = #tpu.dot_dimension_numbers<[1], [0], [0], [1], [0, 0, 1, 1], [], []>} : vector<16x256xbf16>, vector<256x128xbf16>, vector<16x128xf32> -> vector<16x128xf32>
    %29 = vector.broadcast %27 : vector<1x128xf32> to vector<16x128xf32>
    %30 = arith.addf %28, %29 : vector<16x128xf32>
    %cst_23 = arith.constant 0.000000e+00 : f32
    %31 = vector.broadcast %cst_23 : f32 to vector<16x128xf32>
    %32 = arith.maximumf %30, %31 : vector<16x128xf32>
    %33 = arith.truncf %32 : vector<16x128xf32> to vector<16x128xbf16>
    %c0_24 = arith.constant 0 : index
    %c0_25 = arith.constant 0 : index
    %34 = vector.load %arg10[%c0_24, %c0_25] : memref<128x128xbf16, #tpu.memory_space<vmem>>, vector<128x128xbf16>
    %c0_26 = arith.constant 0 : index
    %c0_27 = arith.constant 0 : index
    %35 = vector.load %arg11[%c0_26, %c0_27] : memref<1x128xf32, #tpu.memory_space<vmem>>, vector<1x128xf32>
    %cst_28 = arith.constant dense<0.000000e+00> : vector<16x128xf32>
    %36 = tpu.matmul %33, %34, %cst_28 {dimension_numbers = #tpu.dot_dimension_numbers<[1], [0], [0], [1], [0, 0, 1, 1], [], []>} : vector<16x128xbf16>, vector<128x128xbf16>, vector<16x128xf32> -> vector<16x128xf32>
    %37 = vector.broadcast %35 : vector<1x128xf32> to vector<16x128xf32>
    %38 = arith.addf %36, %37 : vector<16x128xf32>
    %cst_29 = arith.constant 0.000000e+00 : f32
    %39 = vector.broadcast %cst_29 : f32 to vector<16x128xf32>
    %40 = arith.maximumf %38, %39 : vector<16x128xf32>
    %41 = arith.truncf %40 : vector<16x128xf32> to vector<16x128xbf16>
    %c0_30 = arith.constant 0 : index
    %c0_31 = arith.constant 0 : index
    %42 = vector.load %arg12[%c0_30, %c0_31] : memref<128x128xbf16, #tpu.memory_space<vmem>>, vector<128x128xbf16>
    %c0_32 = arith.constant 0 : index
    %c0_33 = arith.constant 0 : index
    %43 = vector.load %arg13[%c0_32, %c0_33] : memref<1x128xf32, #tpu.memory_space<vmem>>, vector<1x128xf32>
    %cst_34 = arith.constant dense<0.000000e+00> : vector<16x128xf32>
    %44 = tpu.matmul %41, %42, %cst_34 {dimension_numbers = #tpu.dot_dimension_numbers<[1], [0], [0], [1], [0, 0, 1, 1], [], []>} : vector<16x128xbf16>, vector<128x128xbf16>, vector<16x128xf32> -> vector<16x128xf32>
    %45 = vector.broadcast %43 : vector<1x128xf32> to vector<16x128xf32>
    %46 = arith.addf %44, %45 : vector<16x128xf32>
    %47 = arith.truncf %46 : vector<16x128xf32> to vector<16x128xbf16>
    %c0_35 = arith.constant 0 : index
    %c0_36 = arith.constant 0 : index
    %48 = vector.load %arg14[%c0_35, %c0_36] : memref<16x128xbf16, #tpu.memory_space<vmem>>, vector<16x128xbf16>
    tpu.vector_store %arg14[%c0_35, %c0_36], %47 {strides = array<i32>} : memref<16x128xbf16, #tpu.memory_space<vmem>>, vector<16x128xbf16>,
    return
  }
  func.func @transform_0(%arg0: i32) -> (i32, i32) {
    %c0_i32 = arith.constant 0 : i32
    %c0_i32_0 = arith.constant 0 : i32
    return %arg0, %c0_i32 : i32, i32
  }
  func.func @transform_1(%arg0: i32) -> (i32, i32) {
    %c0_i32 = arith.constant 0 : i32
    %c0_i32_0 = arith.constant 0 : i32
    %c0_i32_1 = arith.constant 0 : i32
    return %c0_i32, %c0_i32_0 : i32, i32
  }
  func.func @transform_2(%arg0: i32) -> (i32, i32) {
    %c0_i32 = arith.constant 0 : i32
    %c0_i32_0 = arith.constant 0 : i32
    %c0_i32_1 = arith.constant 0 : i32
    return %c0_i32, %c0_i32_0 : i32, i32
  }
  func.func @transform_3(%arg0: i32) -> (i32, i32) {
    %c0_i32 = arith.constant 0 : i32
    %c0_i32_0 = arith.constant 0 : i32
    %c0_i32_1 = arith.constant 0 : i32
    return %c0_i32, %c0_i32_0 : i32, i32
  }
  func.func @transform_4(%arg0: i32) -> (i32, i32) {
    %c0_i32 = arith.constant 0 : i32
    %c0_i32_0 = arith.constant 0 : i32
    %c0_i32_1 = arith.constant 0 : i32
    return %c0_i32, %c0_i32_0 : i32, i32
  }
  func.func @transform_5(%arg0: i32) -> (i32, i32) {
    %c0_i32 = arith.constant 0 : i32
    %c0_i32_0 = arith.constant 0 : i32
    %c0_i32_1 = arith.constant 0 : i32
    return %c0_i32, %c0_i32_0 : i32, i32
  }
  func.func @transform_6(%arg0: i32) -> (i32, i32) {
    %c0_i32 = arith.constant 0 : i32
    %c0_i32_0 = arith.constant 0 : i32
    %c0_i32_1 = arith.constant 0 : i32
    return %c0_i32, %c0_i32_0 : i32, i32
  }
  func.func @transform_7(%arg0: i32) -> (i32, i32) {
    %c0_i32 = arith.constant 0 : i32
    %c0_i32_0 = arith.constant 0 : i32
    %c0_i32_1 = arith.constant 0 : i32
    return %c0_i32, %c0_i32_0 : i32, i32
  }
  func.func @transform_8(%arg0: i32) -> (i32, i32) {
    %c0_i32 = arith.constant 0 : i32
    %c0_i32_0 = arith.constant 0 : i32
    %c0_i32_1 = arith.constant 0 : i32
    return %c0_i32, %c0_i32_0 : i32, i32
  }
  func.func @transform_9(%arg0: i32) -> (i32, i32) {
    %c0_i32 = arith.constant 0 : i32
    %c0_i32_0 = arith.constant 0 : i32
    %c0_i32_1 = arith.constant 0 : i32
    return %c0_i32, %c0_i32_0 : i32, i32
  }
  func.func @transform_10(%arg0: i32) -> (i32, i32) {
    %c0_i32 = arith.constant 0 : i32
    %c0_i32_0 = arith.constant 0 : i32
    %c0_i32_1 = arith.constant 0 : i32
    return %c0_i32, %c0_i32_0 : i32, i32
  }
  func.func @transform_11(%arg0: i32) -> (i32, i32) {
    %c0_i32 = arith.constant 0 : i32
    %c0_i32_0 = arith.constant 0 : i32
    %c0_i32_1 = arith.constant 0 : i32
    return %c0_i32, %c0_i32_0 : i32, i32
  }
  func.func @transform_12(%arg0: i32) -> (i32, i32) {
    %c0_i32 = arith.constant 0 : i32
    %c0_i32_0 = arith.constant 0 : i32
    %c0_i32_1 = arith.constant 0 : i32
    return %c0_i32, %c0_i32_0 : i32, i32
  }
  func.func @transform_13(%arg0: i32) -> (i32, i32) {
    %c0_i32 = arith.constant 0 : i32
    %c0_i32_0 = arith.constant 0 : i32
    return %arg0, %c0_i32 : i32, i32
  }
}

</mosaic_0001>

<bundles_post_ra>
// kernel: tpu_custom_call.1
= control target key start
LH: loop header
LB: loop body
LE: loop exit
PB: predicated region body
PF: predicated region fallthrough
CT: control target
= control target key end

     0   :  { %18 = vsyncpa [#allocation3], 0  ;;  %s5719_s0 = inlined_call_operand.hbm [shape: f32[16,32], index: 0, kind: input, shape index: {}]   ;;  %s5720_s1 = inlined_call_operand.hbm [shape: bf16[32,1024], index: 1, kind: input, shape index: {}]   ;;  %s5721_s2 = inlined_call_operand.hbm [shape: f32[1,1024], index: 2, kind: input, shape index: {}]   ;;  %s5722_s3 = inlined_call_operand.hbm [shape: bf16[1024,512], index: 3, kind: input, shape index: {}]   ;;  %s5723_s4 = inlined_call_operand.hbm [shape: f32[1,512], index: 4, kind: input, shape index: {}]   ;;  %s5724_s5 = inlined_call_operand.hbm [shape: bf16[512,256], index: 5, kind: input, shape index: {}]   ;;  %s5725_s6 = inlined_call_operand.vmem [shape: f32[1,256], index: 6, kind: input, shape index: {}]   ;;  %s5726_s7 = inlined_call_operand.hbm [shape: bf16[256,128], index: 7, kind: input, shape index: {}]   ;;  %s5727_s8 = inlined_call_operand.vmem [shape: f32[1,128], index: 8, kind: input, shape index: {}]   ;;  %s5728_s9 = inlined_call_operand.hbm [shape: bf16[128,128], index: 9, kind: input, shape index: {}]   ;;  %s5729_s10 = inlined_call_operand.vmem [shape: f32[1,128], index: 10, kind: input, shape index: {}]   ;;  %s5730_s11 = inlined_call_operand.hbm [shape: bf16[128,128], index: 11, kind: input, shape index: {}]   ;;  %s5731_s12 = inlined_call_operand.vmem [shape: f32[1,128], index: 12, kind: input, shape index: {}]   ;;  %s5732_s13 = inlined_call_operand.hbm [shape: bf16[16,128], index: 13, kind: output, shape index: {}]  }
   0x1   :  { %19 = vsyncpa [#allocation6], 0 }
   0x2   :  { %20 = vsyncpa [#allocation9], 0 }
   0x3   :  { %21 = vsyncpa [#allocation12], 0 }
   0x4   :  { %22 = vsyncpa [#allocation15], 0  ;;  %s41_s27 = sshll.u32 %s5720_s1, 4  ;;  %s42_s27 = int_to_ptr.hbm [resolvable:$true] %s41_s27 }
   0x5   :  { %23 = vsyncpa [#allocation4], 0  ;;  %s5436_s28 = smov [#allocation5]   ;;  %s65_s15 = sshll.u32 %s5722_s3, 4  ;;  %s66_s15 = int_to_ptr.hbm [resolvable:$true] %s65_s15 }
   0x6   :  { %s43_s29 = sshll.u32 %s5436_s28, 4  ;;  %s5437_s16 = smov 512   ;;  %s44_s29 = int_to_ptr.vmem [resolvable:$true] %s43_s29 }
   0x7   :  { %s5438_s17 = smov 32   ;;  %s5439_s18 = smov [#allocation8]  }
   0x8   :  { %49 = dma.hbm_to_vmem [thread:$0]  %s42_s27, 2048, %s44_s29, [#allocation6], %s5437_s16, %s5437_s16, %s5438_s17  }
   0x9   :  { %s67_s19 = sshll.u32 %s5439_s18, 4  ;;  %s5440_s20 = smov 256   ;;  %s68_s19 = int_to_ptr.vmem [resolvable:$true] %s67_s19 }
   0xa   :  { %s5441_s21 = smov 16   ;;  %s89_s23 = sshll.u32 %s5724_s5, 4  ;;  %s90_s23 = int_to_ptr.hbm [resolvable:$true] %s89_s23 }
   0xb   :  { %73 = dma.hbm_to_vmem [thread:$0]  %s66_s15, 32768, %s68_s19, [#allocation9], %s5440_s20, %s5440_s20, %s5441_s21  }
   0xc   :  { %s5442_s24 = smov [#allocation11]   ;;  %s5443_s26 = smov 128  }
   0xd   :  { %s91_s25 = sshll.u32 %s5442_s24, 4  ;;  %s5444_s3 = smov 8   ;;  %s92_s25 = int_to_ptr.vmem [resolvable:$true] %s91_s25 }
   0xe   :  { %97 = dma.hbm_to_vmem [thread:$0]  %s90_s23, 8192, %s92_s25, [#allocation12], %s5443_s26, %s5443_s26, %s5444_s3  }
   0xf   :  { %s119_s29 = sshll.u32 %s5728_s9, 4  ;;  %s5445_s30 = smov [#allocation14]   ;;  %s120_s29 = int_to_ptr.hbm [resolvable:$true] %s119_s29 }
  0x10   :  { %s121_s14 = sshll.u32 %s5445_s30, 4  ;;  %s28_s17 = sshll.u32 %s5719_s0, 4  ;;  %s122_s14 = int_to_ptr.vmem [resolvable:$true] %s121_s14  ;;  %s29_s17 = int_to_ptr.hbm [resolvable:$true] %s28_s17 }
  0x11   :  { %s5446_s5 = smov 64   ;;  %s5447_s18 = smov 4  }
  0x12   :  { %127 = dma.hbm_to_vmem [thread:$0]  %s120_s29, 1024, %s122_s14, [#allocation15], %s5446_s5, %s5446_s5, %s5447_s18  }
  0x13   :  { %s55_s21 = sshll.u32 %s5721_s2, 4  ;;  %s5448_s9 = smov [#allocation2]   ;;  %s56_s21 = int_to_ptr.hbm [resolvable:$true] %s55_s21 }
  0x14   :  { %s30_s1 = sshll.u32 %s5448_s9, 4  ;;  %s5449_s22 = smov [#allocation7]   ;;  %s31_s1 = int_to_ptr.vmem [resolvable:$true] %s30_s1 }
  0x15   :  { %36 = dma.hbm_to_vmem [thread:$0]  %s29_s17, 256, %s31_s1, [#allocation3], %s5443_s26, %s5443_s26, %s5444_s3  }
  0x16   :  { %s57_s23 = sshll.u32 %s5449_s22, 4  ;;  %s79_s25 = sshll.u32 %s5723_s4, 4  ;;  %s58_s23 = int_to_ptr.vmem [resolvable:$true] %s57_s23  ;;  %s80_s25 = int_to_ptr.hbm [resolvable:$true] %s79_s25 }
  0x17   :  { %60 = dma.hbm_to_vmem [thread:$0]  %s56_s21, 128, %s58_s23, [#allocation6]  }
  0x18   :  { %s104_s29 = sshll.u32 %s5726_s7, 4  ;;  %s5450_s30 = smov [#allocation10]   ;;  %s105_s29 = int_to_ptr.hbm [resolvable:$true] %s104_s29 }
  0x19   :  { %s81_s2 = sshll.u32 %s5450_s30, 4  ;;  %s5451_s14 = smov [#allocation13]   ;;  %s82_s2 = int_to_ptr.vmem [resolvable:$true] %s81_s2 }
  0x1a   :  { %84 = dma.hbm_to_vmem [thread:$0]  %s80_s25, 64, %s82_s2, [#allocation9]  }
  0x1b   :  { %s106_s26 = sshll.u32 %s5451_s14, 4  ;;  %s134_s15 = sshll.u32 %s5730_s11, 4  ;;  %s107_s26 = int_to_ptr.vmem [resolvable:$true] %s106_s26  ;;  %s135_s15 = int_to_ptr.hbm [resolvable:$true] %s134_s15 }
  0x1c   :  { %112 = dma.hbm_to_vmem [thread:$0]  %s105_s29, 2048, %s107_s26, [#allocation12], %s5446_s5, %s5446_s5, %s5447_s18  }
  0x1d   :  { %s5452_s4 = smov [#allocation16]  }
  0x1e   :  { %s136_s17 = sshll.u32 %s5452_s4, 4  ;;  %s137_s17 = int_to_ptr.vmem [resolvable:$true] %s136_s17 }
  0x1f   :  { %142 = dma.hbm_to_vmem [thread:$0]  %s135_s15, 1024, %s137_s17, [#allocation15], %s5446_s5, %s5446_s5, %s5447_s18  }
  0x20   :  { %5424 = dma.done.wait [#allocation3], 256  }
  0x21   :  { %5425 = vsyncadd [#allocation3], 4294967040 }
  0x22   :  { %5426 = dma.done.wait [#allocation6], 2176  }
  0x23   :  { %5427 = vsyncadd [#allocation6], 4294965120 }
  0x24   :  { %5428 = dma.done.wait [#allocation9], 32832  }
  0x25   :  { %5429 = vsyncadd [#allocation9], 4294934464 }
  0x26   :  { %5430 = dma.done.wait [#allocation12], 10240  }
  0x27   :  { %5431 = vsyncadd [#allocation12], 4294957056 }
  0x28   :  { %5432 = dma.done.wait [#allocation15], 2048  }
  0x29   :  { %5433 = vsyncadd [#allocation15], 4294965248  ;;  %v3344_v0 = vld [vmem:[#allocation5 + $0x40] sm:$0xf]  ;;  %v4798_v2 = vld [vmem:[#allocation5 + $0x44] sm:$0xf] }
  0x2a   :  { %v4802_v1 = vld [vmem:[#allocation5 + $0x5c] sm:$0xf0]  ;;  %v3346_v4 = vld [vmem:[#allocation5 + $0x60] sm:$0xf0]  ;;  %v3352_v5 = vld [vmem:[#allocation5 + $0x48] sm:$0xf] }
  0x2b   :  { %v3345_v3 = vor.u32 %v4802_v1, %v3344_v0  ;;  %v4803_v6 = vld [vmem:[#allocation5 + $0x64] sm:$0xf0]  ;;  %v3349_v7 = vor.u32 %v4798_v2, %v3346_v4  ;;  %v4799_v9 = vld [vmem:[#allocation5 + $0x4c] sm:$0xf]  ;;  %v3312_v11 = vld [vmem:[#allocation5] sm:$0xf] }
  0x2c   :  { %v3353_v8 = vor.u32 %v4803_v6, %v3352_v5  ;;  %v3354_v10 = vld [vmem:[#allocation5 + $0x68] sm:$0xf0]  ;;  %v4794_v13 = vld [vmem:[#allocation5 + $0x1c] sm:$0xf0]  ;;  %v4790_v14 = vld [vmem:[#allocation5 + $0x4] sm:$0xf] }
  0x2d   :  { %309 = vmatpush.bf16.msra.mxu0 %v3345_v3  ;;  %v3357_v12 = vor.u32 %v4799_v9, %v3354_v10  ;;  %v3314_v15 = vld [vmem:[#allocation5 + $0x20] sm:$0xf0]  ;;  %323 = vmatpush.bf16.msra.mxu1 %v3349_v7  ;;  %v3313_v16 = vor.u32 %v4794_v13, %v3312_v11  ;;  %v3320_v18 = vld [vmem:[#allocation5 + $0x8] sm:$0xf]  ;;  %v4791_v20 = vld [vmem:[#allocation5 + $0xc] sm:$0xf] }
  0x2e   :  { %337 = vmatpush.bf16.msra.mxu2 %v3353_v8  ;;  %v3317_v17 = vor.u32 %v4790_v14, %v3314_v15  ;;  %v4795_v19 = vld [vmem:[#allocation5 + $0x24] sm:$0xf0]  ;;  %v3322_v22 = vld [vmem:[#allocation5 + $0x28] sm:$0xf0]  ;;  %v182_v23 = vld [vmem:[#allocation2] sm:$0xff]  ;;  %vm299_vm0 = vcmask 261120  }
  0x2f   :  { %351 = vmatpush.bf16.msra.mxu3 %v3357_v12  ;;  %v3321_v21 = vor.u32 %v4795_v19, %v3320_v18  ;;  %v183_v24 = vld [vmem:[#allocation2 + $0x8] sm:$0xff]  ;;  %v3325_v25 = vor.u32 %v4791_v20, %v3322_v22  ;;  %v3360_v27 = vld [vmem:[#allocation5 + $0x50] sm:$0xf]  ;;  %v4800_v29 = vld [vmem:[#allocation5 + $0x54] sm:$0xf]  ;;  %s5453_s1 = smov [#allocation17]  }
  0x30   :  { %v5560_v26 = vpack.c.bf16 %v183_v24, %v182_v23  ;;  %v4804_v28 = vld [vmem:[#allocation5 + $0x6c] sm:$0xf0]  ;;  %v3362_v31 = vld [vmem:[#allocation5 + $0x70] sm:$0xf0]  ;;  %v3368_v32 = vld [vmem:[#allocation5 + $0x58] sm:$0xf] }
  0x31   :  { %310 = vmatpush.bf16.msra.mxu0 %v3313_v16  ;;  %v3361_v30 = vor.u32 %v4804_v28, %v3360_v27  ;;  %v4805_v33 = vld [vmem:[#allocation5 + $0x74] sm:$0xf0]  ;;  %324 = vmatpush.bf16.msra.mxu1 %v3317_v17  ;;  %v3365_v34 = vor.u32 %v4800_v29, %v3362_v31  ;;  %v4801_v36 = vld [vmem:[#allocation5 + $0x5c] sm:$0xf]  ;;  %v3328_v38 = vld [vmem:[#allocation5 + $0x10] sm:$0xf] }
  0x32   :  { %338 = vmatpush.bf16.msra.mxu2 %v3321_v21  ;;  %v3369_v35 = vor.u32 %v4805_v33, %v3368_v32  ;;  %v3370_v37 = vld [vmem:[#allocation5 + $0x78] sm:$0xf0]  ;;  %v4796_v40 = vld [vmem:[#allocation5 + $0x2c] sm:$0xf0]  ;;  %v4792_v41 = vld [vmem:[#allocation5 + $0x14] sm:$0xf] }
  0x33   :  { %352 = vmatpush.bf16.msra.mxu3 %v3325_v25  ;;  %v3373_v39 = vor.u32 %v4801_v36, %v3370_v37  ;;  %v3330_v42 = vld [vmem:[#allocation5 + $0x30] sm:$0xf0]  ;;  %v3329_v43 = vor.u32 %v4796_v40, %v3328_v38  ;;  %v3336_v45 = vld [vmem:[#allocation5 + $0x18] sm:$0xf]  ;;  %v4793_v47 = vld [vmem:[#allocation5 + $0x1c] sm:$0xf] }
  0x34   :  { %3374 = vmatmul.msk.bf16.vlgmr.msra.gmra.mxu0 %vm299_vm0, %v5560_v26  ;;  %v3333_v44 = vor.u32 %v4792_v41, %v3330_v42  ;;  %v4797_v46 = vld [vmem:[#allocation5 + $0x34] sm:$0xf0]  ;;  %3375 = vmatmul.msk.bf16.vlgmr.msra.gmra.mxu1 %vm299_vm0, %v5560_v26  ;;  %v3338_v48 = vld [vmem:[#allocation5 + $0x38] sm:$0xf0]  ;;  %v3496_v49 = vld [vmem:[#allocation8 + $0xe0] sm:$0xf] }
  0x35   :  { %365 = vmatpush.bf16.msrb.mxu0 %v3361_v30  ;;  %379 = vmatpush.bf16.msrb.mxu1 %v3365_v34  ;;  %v4836_v50 = vld [vmem:[#allocation8 + $0xec] sm:$0xf0]  ;;  %v3337_v51 = vor.u32 %v4797_v46, %v3336_v45  ;;  %v3624_v53 = vld [vmem:[#allocation8 + $0x1e0] sm:$0xf]  ;;  %v3341_v56 = vor.u32 %v4793_v47, %v3338_v48  ;;  %s3291_s22 = sshll.u32 %s5453_s1, 4  ;;  %s3293_s24 = sshll.u32 %s5732_s13, 4  ;;  %s3292_s22 = int_to_ptr.vmem [resolvable:$true] %s3291_s22  ;;  %s3294_s24 = int_to_ptr.hbm [resolvable:$true] %s3293_s24 }
  0x36   :  { %3376 = vmatmul.msk.bf16.vlgmr.msra.gmra.mxu2 %vm299_vm0, %v5560_v26  ;;  %3377 = vmatmul.msk.bf16.vlgmr.msra.gmra.mxu3 %vm299_vm0, %v5560_v26  ;;  %v3497_v52 = vor.u32 %v4836_v50, %v3496_v49  ;;  %v4868_v54 = vld [vmem:[#allocation8 + $0x1ec] sm:$0xf0]  ;;  %v3480_v55 = vld [vmem:[#allocation8 + $0xc0] sm:$0xf] }
  0x37   :  { %393 = vmatpush.bf16.msrb.mxu2 %v3369_v35  ;;  %407 = vmatpush.bf16.msrb.mxu3 %v3373_v39  ;;  %v3625_v57 = vor.u32 %v4868_v54, %v3624_v53  ;;  %v4832_v58 = vld [vmem:[#allocation8 + $0xcc] sm:$0xf0]  ;;  %v3608_v59 = vld [vmem:[#allocation8 + $0x1c0] sm:$0xf] }
  0x38   :  { %v4864_v60 = vld [vmem:[#allocation8 + $0x1cc] sm:$0xf0]  ;;  %v3481_v61 = vor.u32 %v4832_v58, %v3480_v55  ;;  %v3752_v62 = vld [vmem:[#allocation8 + $0x2e0] sm:$0xf] }
  0x39   :  { %366 = vmatpush.bf16.msrb.mxu0 %v3329_v43  ;;  %380 = vmatpush.bf16.msrb.mxu1 %v3333_v44  ;;  %v4900_v63 = vld [vmem:[#allocation8 + $0x2ec] sm:$0xf0]  ;;  %v3880_v0 = vld [vmem:[#allocation8 + $0x3e0] sm:$0xf]  ;;  %v3609_v1 = vor.u32 %v4864_v60, %v3608_v59 }
  0x3a   :  { %v3753_v2 = vor.u32 %v4900_v63, %v3752_v62  ;;  %v4932_v3 = vld [vmem:[#allocation8 + $0x3ec] sm:$0xf0]  ;;  %v3464_v4 = vld [vmem:[#allocation8 + $0xa0] sm:$0xf] }
  0x3b   :  { %v4828_v5 = vld [vmem:[#allocation8 + $0xac] sm:$0xf0]  ;;  %394 = vmatpush.bf16.msrb.mxu2 %v3337_v51  ;;  %v3881_v6 = vor.u32 %v4932_v3, %v3880_v0  ;;  %v3592_v7 = vld [vmem:[#allocation8 + $0x1a0] sm:$0xf]  ;;  %408 = vmatpush.bf16.msrb.mxu3 %v3341_v56 }
  0x3c   :  { %v4860_v8 = vld [vmem:[#allocation8 + $0x1ac] sm:$0xf0]  ;;  %v3736_v9 = vld [vmem:[#allocation8 + $0x2c0] sm:$0xf]  ;;  %v3465_v13 = vor.u32 %v4828_v5, %v3464_v4 }
  0x3d   :  { %1985 = vmatpush.bf16.msra.mxu0 %v3497_v52  ;;  %1999 = vmatpush.bf16.msra.mxu1 %v3625_v57  ;;  %v4896_v10 = vld [vmem:[#allocation8 + $0x2cc] sm:$0xf0]  ;;  %v3864_v11 = vld [vmem:[#allocation8 + $0x3c0] sm:$0xf]  ;;  %v3593_v16 = vor.u32 %v4860_v8, %v3592_v7 }
  0x3e   :  { %v4928_v12 = vld [vmem:[#allocation8 + $0x3cc] sm:$0xf0]  ;;  %v3737_v14 = vor.u32 %v4896_v10, %v3736_v9  ;;  %v3720_v17 = vld [vmem:[#allocation8 + $0x2a0] sm:$0xf] }
  0x3f   :  { %2013 = vmatpush.bf16.msra.mxu2 %v3753_v2  ;;  %2027 = vmatpush.bf16.msra.mxu3 %v3881_v6  ;;  %v3865_v15 = vor.u32 %v4928_v12, %v3864_v11  ;;  %v4892_v18 = vld [vmem:[#allocation8 + $0x2ac] sm:$0xf0]  ;;  %v3848_v19 = vld [vmem:[#allocation8 + $0x3a0] sm:$0xf] }
  0x40   :  { %v4924_v20 = vld [vmem:[#allocation8 + $0x3ac] sm:$0xf0]  ;;  %v3448_v21 = vld [vmem:[#allocation8 + $0x80] sm:$0xf]  ;;  %v3721_v24 = vor.u32 %v4892_v18, %v3720_v17 }
  0x41   :  { %1986 = vmatpush.bf16.msra.mxu0 %v3481_v61  ;;  %2000 = vmatpush.bf16.msra.mxu1 %v3609_v1  ;;  %v4824_v22 = vld [vmem:[#allocation8 + $0x8c] sm:$0xf0]  ;;  %v3576_v23 = vld [vmem:[#allocation8 + $0x180] sm:$0xf]  ;;  %v3849_v27 = vor.u32 %v4924_v20, %v3848_v19 }
  0x42   :  { %v4856_v25 = vld [vmem:[#allocation8 + $0x18c] sm:$0xf0]  ;;  %v3704_v28 = vld [vmem:[#allocation8 + $0x280] sm:$0xf]  ;;  %v3449_v32 = vor.u32 %v4824_v22, %v3448_v21 }
  0x43   :  { %2014 = vmatpush.bf16.msra.mxu2 %v3737_v14  ;;  %2028 = vmatpush.bf16.msra.mxu3 %v3865_v15  ;;  %v4888_v29 = vld [vmem:[#allocation8 + $0x28c] sm:$0xf0]  ;;  %v3832_v30 = vld [vmem:[#allocation8 + $0x380] sm:$0xf]  ;;  %v3577_v33 = vor.u32 %v4856_v25, %v3576_v23 }
  0x44   :  { %v4920_v31 = vld [vmem:[#allocation8 + $0x38c] sm:$0xf0]  ;;  %v3432_v34 = vld [vmem:[#allocation8 + $0x60] sm:$0xf]  ;;  %v3705_v37 = vor.u32 %v4888_v29, %v3704_v28  ;;  %3378 = vmatmul.msk.bf16.vlgmr.msrb.gmra.mxu0 %vm299_vm0, %v5560_v26  ;;  %3379 = vmatmul.msk.bf16.vlgmr.msrb.gmra.mxu1 %vm299_vm0, %v5560_v26 }
  0x45   :  { %1987 = vmatpush.bf16.msra.mxu0 %v3465_v13  ;;  %2001 = vmatpush.bf16.msra.mxu1 %v3593_v16  ;;  %v4820_v35 = vld [vmem:[#allocation8 + $0x6c] sm:$0xf0]  ;;  %v3560_v36 = vld [vmem:[#allocation8 + $0x160] sm:$0xf]  ;;  %v3833_v39 = vor.u32 %v4920_v31, %v3832_v30 }
  0x46   :  { %v4852_v38 = vld [vmem:[#allocation8 + $0x16c] sm:$0xf0]  ;;  %v3688_v40 = vld [vmem:[#allocation8 + $0x260] sm:$0xf]  ;;  %3380 = vmatmul.msk.bf16.vlgmr.msrb.gmra.mxu2 %vm299_vm0, %v5560_v26  ;;  %3381 = vmatmul.msk.bf16.vlgmr.msrb.gmra.mxu3 %vm299_vm0, %v5560_v26  ;;  %v3433_v44 = vor.u32 %v4820_v35, %v3432_v34 }
  0x47   :  { %2015 = vmatpush.bf16.msra.mxu2 %v3721_v24  ;;  %2029 = vmatpush.bf16.msra.mxu3 %v3849_v27  ;;  %v4884_v41 = vld [vmem:[#allocation8 + $0x26c] sm:$0xf0]  ;;  %v3816_v42 = vld [vmem:[#allocation8 + $0x360] sm:$0xf]  ;;  %v3561_v45 = vor.u32 %v4852_v38, %v3560_v36 }
  0x48   :  { %v4916_v43 = vld [vmem:[#allocation8 + $0x36c] sm:$0xf0]  ;;  %v3416_v46 = vld [vmem:[#allocation8 + $0x40] sm:$0xf]  ;;  %v3689_v49 = vor.u32 %v4884_v41, %v3688_v40 }
  0x49   :  { %1988 = vmatpush.bf16.msra.mxu0 %v3449_v32  ;;  %2002 = vmatpush.bf16.msra.mxu1 %v3577_v33  ;;  %v4816_v47 = vld [vmem:[#allocation8 + $0x4c] sm:$0xf0]  ;;  %v3544_v48 = vld [vmem:[#allocation8 + $0x140] sm:$0xf]  ;;  %v3817_v51 = vor.u32 %v4916_v43, %v3816_v42 }
  0x4a   :  { %v4848_v50 = vld [vmem:[#allocation8 + $0x14c] sm:$0xf0]  ;;  %v3672_v52 = vld [vmem:[#allocation8 + $0x240] sm:$0xf]  ;;  %v3417_v56 = vor.u32 %v4816_v47, %v3416_v46 }
  0x4b   :  { %2016 = vmatpush.bf16.msra.mxu2 %v3705_v37  ;;  %2030 = vmatpush.bf16.msra.mxu3 %v3833_v39  ;;  %v4880_v53 = vld [vmem:[#allocation8 + $0x24c] sm:$0xf0]  ;;  %v3800_v54 = vld [vmem:[#allocation8 + $0x340] sm:$0xf]  ;;  %v3545_v26 = vor.u32 %v4848_v50, %v3544_v48 }
  0x4c   :  { %v4912_v55 = vld [vmem:[#allocation8 + $0x34c] sm:$0xf0]  ;;  %v3400_v57 = vld [vmem:[#allocation8 + $0x20] sm:$0xf]  ;;  %v3673_v60 = vor.u32 %v4880_v53, %v3672_v52 }
  0x4d   :  { %1989 = vmatpush.bf16.msra.mxu0 %v3433_v44  ;;  %2003 = vmatpush.bf16.msra.mxu1 %v3561_v45  ;;  %v4812_v58 = vld [vmem:[#allocation8 + $0x2c] sm:$0xf0]  ;;  %v3528_v59 = vld [vmem:[#allocation8 + $0x120] sm:$0xf]  ;;  %v3801_v62 = vor.u32 %v4912_v55, %v3800_v54 }
  0x4e   :  { %v4844_v61 = vld [vmem:[#allocation8 + $0x12c] sm:$0xf0]  ;;  %v3656_v63 = vld [vmem:[#allocation8 + $0x220] sm:$0xf]  ;;  %v3401_v3 = vor.u32 %v4812_v58, %v3400_v57 }
  0x4f   :  { %2017 = vmatpush.bf16.msra.mxu2 %v3689_v49  ;;  %2031 = vmatpush.bf16.msra.mxu3 %v3817_v51  ;;  %v4876_v0 = vld [vmem:[#allocation8 + $0x22c] sm:$0xf0]  ;;  %v3784_v1 = vld [vmem:[#allocation8 + $0x320] sm:$0xf]  ;;  %v3529_v7 = vor.u32 %v4844_v61, %v3528_v59 }
  0x50   :  { %v4908_v2 = vld [vmem:[#allocation8 + $0x32c] sm:$0xf0]  ;;  %v3384_v4 = vld [vmem:[#allocation8] sm:$0xf]  ;;  %v3657_v11 = vor.u32 %v4876_v0, %v3656_v63 }
  0x51   :  { %1990 = vmatpush.bf16.msra.mxu0 %v3417_v56  ;;  %v4808_v5 = vld [vmem:[#allocation8 + $0xc] sm:$0xf0]  ;;  %v3512_v6 = vld [vmem:[#allocation8 + $0x100] sm:$0xf]  ;;  %2004 = vmatpush.bf16.msra.mxu1 %v3545_v26  ;;  %v3785_v14 = vor.u32 %v4908_v2, %v3784_v1 }
  0x52   :  { %v4840_v8 = vld [vmem:[#allocation8 + $0x10c] sm:$0xf0]  ;;  %v4008_v9 = vld [vmem:[#allocation8 + $0x4e0] sm:$0xf]  ;;  %v3385_v19 = vor.u32 %v4808_v5, %v3384_v4 }
  0x53   :  { %2018 = vmatpush.bf16.msra.mxu2 %v3673_v60  ;;  %v4964_v10 = vld [vmem:[#allocation8 + $0x4ec] sm:$0xf0]  ;;  %2032 = vmatpush.bf16.msra.mxu3 %v3801_v62  ;;  %v4136_v12 = vld [vmem:[#allocation8 + $0x5e0] sm:$0xf]  ;;  %v3513_v23 = vor.u32 %v4840_v8, %v3512_v6 }
  0x54   :  { %v4996_v13 = vld [vmem:[#allocation8 + $0x5ec] sm:$0xf0]  ;;  %v3640_v15 = vld [vmem:[#allocation8 + $0x200] sm:$0xf]  ;;  %v4009_v24 = vor.u32 %v4964_v10, %v4008_v9 }
  0x55   :  { %v4872_v16 = vld [vmem:[#allocation8 + $0x20c] sm:$0xf0]  ;;  %v3768_v17 = vld [vmem:[#allocation8 + $0x300] sm:$0xf]  ;;  %1991 = vmatpush.bf16.msra.mxu0 %v3401_v3  ;;  %2005 = vmatpush.bf16.msra.mxu1 %v3529_v7  ;;  %v4137_v27 = vor.u32 %v4996_v13, %v4136_v12 }
  0x56   :  { %v4904_v18 = vld [vmem:[#allocation8 + $0x30c] sm:$0xf0]  ;;  %v4264_v20 = vld [vmem:[#allocation8 + $0x6e0] sm:$0xf]  ;;  %v3641_v30 = vor.u32 %v4872_v16, %v3640_v15 }
  0x57   :  { %v5028_v21 = vld [vmem:[#allocation8 + $0x6ec] sm:$0xf0]  ;;  %v4392_v22 = vld [vmem:[#allocation8 + $0x7e0] sm:$0xf]  ;;  %2019 = vmatpush.bf16.msra.mxu2 %v3657_v11  ;;  %2033 = vmatpush.bf16.msra.mxu3 %v3785_v14  ;;  %v3769_v33 = vor.u32 %v4904_v18, %v3768_v17 }
  0x58   :  { %v5060_v25 = vld [vmem:[#allocation8 + $0x7ec] sm:$0xf0]  ;;  %v3992_v28 = vld [vmem:[#allocation8 + $0x4c0] sm:$0xf]  ;;  %v4265_v34 = vor.u32 %v5028_v21, %v4264_v20 }
  0x59   :  { %v4960_v29 = vld [vmem:[#allocation8 + $0x4cc] sm:$0xf0]  ;;  %v4120_v31 = vld [vmem:[#allocation8 + $0x5c0] sm:$0xf]  ;;  %1992 = vmatpush.bf16.msra.mxu0 %v3385_v19  ;;  %v4393_v35 = vor.u32 %v5060_v25, %v4392_v22  ;;  %2006 = vmatpush.bf16.msra.mxu1 %v3513_v23 }
  0x5a   :  { %v4992_v32 = vld [vmem:[#allocation8 + $0x5cc] sm:$0xf0]  ;;  %v4248_v36 = vld [vmem:[#allocation8 + $0x6c0] sm:$0xf]  ;;  %v3993_v38 = vor.u32 %v4960_v29, %v3992_v28 }
  0x5b   :  { %v5024_v37 = vld [vmem:[#allocation8 + $0x6cc] sm:$0xf0]  ;;  %v4376_v39 = vld [vmem:[#allocation8 + $0x7c0] sm:$0xf]  ;;  %v4121_v41 = vor.u32 %v4992_v32, %v4120_v31  ;;  %2020 = vmatpush.bf16.msra.mxu2 %v3641_v30  ;;  %2034 = vmatpush.bf16.msra.mxu3 %v3769_v33 }
  0x5c   :  { %v5056_v40 = vld [vmem:[#allocation8 + $0x7cc] sm:$0xf0]  ;;  %v3976_v42 = vld [vmem:[#allocation8 + $0x4a0] sm:$0xf]  ;;  %v4249_v46 = vor.u32 %v5024_v37, %v4248_v36 }
  0x5d   :  { %2041 = vmatpush.bf16.msrb.mxu0 %v4009_v24  ;;  %2055 = vmatpush.bf16.msrb.mxu1 %v4137_v27  ;;  %v4956_v43 = vld [vmem:[#allocation8 + $0x4ac] sm:$0xf0]  ;;  %v4104_v44 = vld [vmem:[#allocation8 + $0x5a0] sm:$0xf]  ;;  %v4377_v47 = vor.u32 %v5056_v40, %v4376_v39 }
  0x5e   :  { %v4988_v45 = vld [vmem:[#allocation8 + $0x5ac] sm:$0xf0]  ;;  %v3977_v48 = vor.u32 %v4956_v43, %v3976_v42  ;;  %v3960_v50 = vld [vmem:[#allocation8 + $0x480] sm:$0xf] }
  0x5f   :  { %2069 = vmatpush.bf16.msrb.mxu2 %v4265_v34  ;;  %2083 = vmatpush.bf16.msrb.mxu3 %v4393_v35  ;;  %v4105_v49 = vor.u32 %v4988_v45, %v4104_v44  ;;  %v4952_v51 = vld [vmem:[#allocation8 + $0x48c] sm:$0xf0]  ;;  %v4088_v52 = vld [vmem:[#allocation8 + $0x580] sm:$0xf] }
  0x60   :  { %v4984_v53 = vld [vmem:[#allocation8 + $0x58c] sm:$0xf0]  ;;  %v3961_v54 = vor.u32 %v4952_v51, %v3960_v50  ;;  %v4232_v56 = vld [vmem:[#allocation8 + $0x6a0] sm:$0xf] }
  0x61   :  { %2042 = vmatpush.bf16.msrb.mxu0 %v3993_v38  ;;  %2056 = vmatpush.bf16.msrb.mxu1 %v4121_v41  ;;  %v4089_v55 = vor.u32 %v4984_v53, %v4088_v52  ;;  %v5020_v26 = vld [vmem:[#allocation8 + $0x6ac] sm:$0xf0]  ;;  %v4360_v57 = vld [vmem:[#allocation8 + $0x7a0] sm:$0xf]  ;;  %v5578_v52 = vld [vmem:[#allocation7] sm:$0xff] }
  0x62   :  { %v4233_v58 = vor.u32 %v5020_v26, %v4232_v56  ;;  %v5052_v59 = vld [vmem:[#allocation8 + $0x7ac] sm:$0xf0]  ;;  %v3944_v61 = vld [vmem:[#allocation8 + $0x460] sm:$0xf]  ;;  %v204_v56 = vperm.slane %v5578_v52, 1 }
  0x63   :  { %2070 = vmatpush.bf16.msrb.mxu2 %v4249_v46  ;;  %2084 = vmatpush.bf16.msrb.mxu3 %v4377_v47  ;;  %v4361_v60 = vor.u32 %v5052_v59, %v4360_v57  ;;  %v4948_v62 = vld [vmem:[#allocation8 + $0x46c] sm:$0xf0]  ;;  %v4072_v63 = vld [vmem:[#allocation8 + $0x560] sm:$0xf] }
  0x64   :  { %v3945_v0 = vor.u32 %v4948_v62, %v3944_v61  ;;  %v4980_v1 = vld [vmem:[#allocation8 + $0x56c] sm:$0xf0]  ;;  %v4216_v3 = vld [vmem:[#allocation8 + $0x680] sm:$0xf] }
  0x65   :  { %2043 = vmatpush.bf16.msrb.mxu0 %v3977_v48  ;;  %2057 = vmatpush.bf16.msrb.mxu1 %v4105_v49  ;;  %v4073_v2 = vor.u32 %v4980_v1, %v4072_v63  ;;  %v5016_v4 = vld [vmem:[#allocation8 + $0x68c] sm:$0xf0]  ;;  %v4344_v6 = vld [vmem:[#allocation8 + $0x780] sm:$0xf]  ;;  %v3498_v1 = vld [vmem:[#allocation8 + $0xf0] sm:$0xf0] }
  0x66   :  { %v4217_v5 = vor.u32 %v5016_v4, %v4216_v3  ;;  %v5048_v7 = vld [vmem:[#allocation8 + $0x78c] sm:$0xf0]  ;;  %v3928_v9 = vld [vmem:[#allocation8 + $0x440] sm:$0xf]  ;;  %v205_v3 = vperm.slane %v5578_v52, 2 }
  0x67   :  { %2071 = vmatpush.bf16.msrb.mxu2 %v4233_v58  ;;  %2085 = vmatpush.bf16.msrb.mxu3 %v4361_v60  ;;  %v4345_v8 = vor.u32 %v5048_v7, %v4344_v6  ;;  %v4944_v10 = vld [vmem:[#allocation8 + $0x44c] sm:$0xf0]  ;;  %v4056_v11 = vld [vmem:[#allocation8 + $0x540] sm:$0xf]  ;;  %v3626_v6 = vld [vmem:[#allocation8 + $0x1f0] sm:$0xf0] }
  0x68   :  { %v3929_v12 = vor.u32 %v4944_v10, %v3928_v9  ;;  %v4976_v13 = vld [vmem:[#allocation8 + $0x54c] sm:$0xf0]  ;;  %v4200_v15 = vld [vmem:[#allocation8 + $0x660] sm:$0xf]  ;;  %v206_v7 = vperm.slane %v5578_v52, 3 }
  0x69   :  { %2044 = vmatpush.bf16.msrb.mxu0 %v3961_v54  ;;  %2058 = vmatpush.bf16.msrb.mxu1 %v4089_v55  ;;  %v4057_v14 = vor.u32 %v4976_v13, %v4056_v11  ;;  %v5012_v16 = vld [vmem:[#allocation8 + $0x66c] sm:$0xf0]  ;;  %v4328_v17 = vld [vmem:[#allocation8 + $0x760] sm:$0xf]  ;;  %v203_v54 = vperm.slane %v5578_v52, 0 }
  0x6a   :  { %v4201_v18 = vor.u32 %v5012_v16, %v4200_v15  ;;  %v5044_v19 = vld [vmem:[#allocation8 + $0x76c] sm:$0xf0]  ;;  %v3912_v21 = vld [vmem:[#allocation8 + $0x420] sm:$0xf]  ;;  %v4830_v13 = vld [vmem:[#allocation8 + $0xc4] sm:$0xf] }
  0x6b   :  { %2072 = vmatpush.bf16.msrb.mxu2 %v4217_v5  ;;  %2086 = vmatpush.bf16.msrb.mxu3 %v4345_v8  ;;  %v4329_v20 = vor.u32 %v5044_v19, %v4328_v17  ;;  %v4940_v22 = vld [vmem:[#allocation8 + $0x42c] sm:$0xf0]  ;;  %v4040_v24 = vld [vmem:[#allocation8 + $0x520] sm:$0xf]  ;;  %v4866_v5 = vld [vmem:[#allocation8 + $0x1e4] sm:$0xf] }
  0x6c   :  { %v3913_v23 = vor.u32 %v4940_v22, %v3912_v21  ;;  %v4972_v25 = vld [vmem:[#allocation8 + $0x52c] sm:$0xf0]  ;;  %v4184_v28 = vld [vmem:[#allocation8 + $0x640] sm:$0xf]  ;;  %v4862_v17 = vld [vmem:[#allocation8 + $0x1c4] sm:$0xf] }
  0x6d   :  { %2045 = vmatpush.bf16.msrb.mxu0 %v3945_v0  ;;  %2059 = vmatpush.bf16.msrb.mxu1 %v4073_v2  ;;  %v4041_v27 = vor.u32 %v4972_v25, %v4040_v24  ;;  %v5008_v29 = vld [vmem:[#allocation8 + $0x64c] sm:$0xf0]  ;;  %v4312_v30 = vld [vmem:[#allocation8 + $0x740] sm:$0xf]  ;;  %v4834_v0 = vld [vmem:[#allocation8 + $0xe4] sm:$0xf] }
  0x6e   :  { %v4185_v31 = vor.u32 %v5008_v29, %v4184_v28  ;;  %v5040_v32 = vld [vmem:[#allocation8 + $0x74c] sm:$0xf0]  ;;  %v3896_v34 = vld [vmem:[#allocation8 + $0x400] sm:$0xf]  ;;  %v3501_v10 = vor.u32 %v4834_v0, %v3498_v1  ;;  %v4898_v21 = vld [vmem:[#allocation8 + $0x2e4] sm:$0xf] }
  0x6f   :  { %2073 = vmatpush.bf16.msrb.mxu2 %v4201_v18  ;;  %2087 = vmatpush.bf16.msrb.mxu3 %v4329_v20  ;;  %v4313_v33 = vor.u32 %v5040_v32, %v4312_v30  ;;  %v4936_v35 = vld [vmem:[#allocation8 + $0x40c] sm:$0xf0]  ;;  %v4024_v36 = vld [vmem:[#allocation8 + $0x500] sm:$0xf]  ;;  %v3610_v18 = vld [vmem:[#allocation8 + $0x1d0] sm:$0xf0] }
  0x70   :  { %v3897_v37 = vor.u32 %v4936_v35, %v3896_v34  ;;  %v4968_v38 = vld [vmem:[#allocation8 + $0x50c] sm:$0xf0]  ;;  %v4168_v40 = vld [vmem:[#allocation8 + $0x620] sm:$0xf]  ;;  %v207_v24 = vperm.slane %v5578_v52, 4 }
  0x71   :  { %2046 = vmatpush.bf16.msrb.mxu0 %v3929_v12  ;;  %2060 = vmatpush.bf16.msrb.mxu1 %v4057_v14  ;;  %v4025_v39 = vor.u32 %v4968_v38, %v4024_v36  ;;  %v5004_v41 = vld [vmem:[#allocation8 + $0x62c] sm:$0xf0]  ;;  %v4296_v42 = vld [vmem:[#allocation8 + $0x720] sm:$0xf]  ;;  %v3629_v12 = vor.u32 %v4866_v5, %v3626_v6  ;;  %v3482_v14 = vld [vmem:[#allocation8 + $0xd0] sm:$0xf0] }
  0x72   :  { %v5036_v43 = vld [vmem:[#allocation8 + $0x72c] sm:$0xf0]  ;;  %v4169_v44 = vor.u32 %v5004_v41, %v4168_v40  ;;  %v4152_v46 = vld [vmem:[#allocation8 + $0x600] sm:$0xf]  ;;  %v3485_v28 = vor.u32 %v4830_v13, %v3482_v14  ;;  %v3754_v29 = vld [vmem:[#allocation8 + $0x2f0] sm:$0xf0] }
  0x73   :  { %2074 = vmatpush.bf16.msrb.mxu2 %v4185_v31  ;;  %2088 = vmatpush.bf16.msrb.mxu3 %v4313_v33  ;;  %v4297_v45 = vor.u32 %v5036_v43, %v4296_v42  ;;  %v5000_v47 = vld [vmem:[#allocation8 + $0x60c] sm:$0xf0]  ;;  %v4280_v49 = vld [vmem:[#allocation8 + $0x700] sm:$0xf]  ;;  %v4930_v30 = vld [vmem:[#allocation8 + $0x3e4] sm:$0xf]  ;;  %v3613_v33 = vor.u32 %v4862_v17, %v3610_v18  ;;  %v3757_v43 = vor.u32 %v4898_v21, %v3754_v29 }
  0x74   :  { %v4153_v48 = vor.u32 %v5000_v47, %v4152_v46  ;;  %v5032_v50 = vld [vmem:[#allocation8 + $0x70c] sm:$0xf0]  ;;  %v3882_v34 = vld [vmem:[#allocation8 + $0x3f0] sm:$0xf0]  ;;  %v4826_v35 = vld [vmem:[#allocation8 + $0xa4] sm:$0xf] }
  0x75   :  { %2047 = vmatpush.bf16.msrb.mxu0 %v3913_v23  ;;  %2061 = vmatpush.bf16.msrb.mxu1 %v4041_v27  ;;  %v4281_v51 = vor.u32 %v5032_v50, %v4280_v49  ;;  %v208_v27 = vperm.slane %v5578_v52, 5  ;;  %v3466_v36 = vld [vmem:[#allocation8 + $0xb0] sm:$0xf0]  ;;  %v4894_v47 = vld [vmem:[#allocation8 + $0x2c4] sm:$0xf] }
  0x76   :  { %v3594_v40 = vld [vmem:[#allocation8 + $0x1b0] sm:$0xf0]  ;;  %v3469_v46 = vor.u32 %v4826_v35, %v3466_v36  ;;  %v4926_v49 = vld [vmem:[#allocation8 + $0x3c4] sm:$0xf] }
  0x77   :  { %2075 = vmatpush.bf16.msrb.mxu2 %v4169_v44  ;;  %2089 = vmatpush.bf16.msrb.mxu3 %v4297_v45  ;;  %v3885_v45 = vor.u32 %v4930_v30, %v3882_v34  ;;  %v3850_v5 = vld [vmem:[#allocation8 + $0x3b0] sm:$0xf0]  ;;  %v4850_v17 = vld [vmem:[#allocation8 + $0x164] sm:$0xf] }
  0x78   :  { %v3434_v13 = vld [vmem:[#allocation8 + $0x70] sm:$0xf0]  ;;  %v4846_v35 = vld [vmem:[#allocation8 + $0x144] sm:$0xf] }
  0x79   :  { %2048 = vmatpush.bf16.msrb.mxu0 %v3897_v37  ;;  %2062 = vmatpush.bf16.msrb.mxu1 %v4025_v39  ;;  %v4858_v39 = vld [vmem:[#allocation8 + $0x1a4] sm:$0xf]  ;;  %v3562_v18 = vld [vmem:[#allocation8 + $0x170] sm:$0xf0] }
  0x7a   :  { %v3565_v30 = vor.u32 %v4850_v17, %v3562_v18  ;;  %v3418_v34 = vld [vmem:[#allocation8 + $0x50] sm:$0xf0]  ;;  %v4874_v17 = vld [vmem:[#allocation8 + $0x224] sm:$0xf] }
  0x7b   :  { %2076 = vmatpush.bf16.msrb.mxu2 %v4153_v48  ;;  %2090 = vmatpush.bf16.msrb.mxu3 %v4281_v51  ;;  %v3738_v48 = vld [vmem:[#allocation8 + $0x2d0] sm:$0xf0] }
  0x7c   :  { %v3546_v36 = vld [vmem:[#allocation8 + $0x150] sm:$0xf0] }
  0x7d   :  { %v3658_v18 = vld [vmem:[#allocation8 + $0x230] sm:$0xf0] }
  0xb1   :  { %v312_v53 = vpop.f32.mrf.mxu0  ;;  %v326_v55 = vpop.f32.mrf.mxu1 }
  0xb2   :  { %v313_v26 = vadd.f32 %v312_v53, %v203_v54  ;;  %v327_v57 = vadd.f32 %v326_v55, %v204_v56  ;;  %v3597_v53 = vor.u32 %v4858_v39, %v3594_v40  ;;  %v4822_v55 = vld [vmem:[#allocation8 + $0x84] sm:$0xf]  ;;  %v3690_v40 = vld [vmem:[#allocation8 + $0x270] sm:$0xf0] }
  0xb3   :  { %v4882_v39 = vld [vmem:[#allocation8 + $0x264] sm:$0xf] }
  0xb4   :  { %v415_v61 = vmax.f32 %v313_v26, 0.0  ;;  %v416_v2 = vmax.f32 %v327_v57, 0.0  ;;  %v4854_v57 = vld [vmem:[#allocation8 + $0x184] sm:$0xf] }
  0xb9   :  { %v340_v58 = vpop.f32.mrf.mxu2  ;;  %v354_v59 = vpop.f32.mrf.mxu3 }
  0xba   :  { %v314_v60 = vpop.f32.mrf.mxu0  ;;  %v328_v63 = vpop.f32.mrf.mxu1  ;;  %v341_v15 = vadd.f32 %v340_v58, %v205_v3  ;;  %v355_v19 = vadd.f32 %v354_v59, %v206_v7  ;;  %v3578_v58 = vld [vmem:[#allocation8 + $0x190] sm:$0xf0]  ;;  %v209_v59 = vperm.slane %v5578_v52, 6 }
  0xbb   :  { %v315_v62 = vadd.f32 %v314_v60, %v203_v54  ;;  %v329_v4 = vadd.f32 %v328_v63, %v204_v56  ;;  %v3866_v54 = vld [vmem:[#allocation8 + $0x3d0] sm:$0xf0] }
  0xbc   :  { %v417_v37 = vmax.f32 %v341_v15, 0.0  ;;  %v418_v41 = vmax.f32 %v355_v19, 0.0  ;;  %v3450_v56 = vld [vmem:[#allocation8 + $0x90] sm:$0xf0]  ;;  %v3869_v1 = vor.u32 %v4926_v49, %v3866_v54  ;;  %v4810_v54 = vld [vmem:[#allocation8 + $0x24] sm:$0xf] }
  0xbd   :  { %v423_v8 = vmax.f32 %v315_v62, 0.0  ;;  %v424_v9 = vmax.f32 %v329_v4, 0.0  ;;  %v4890_v62 = vld [vmem:[#allocation8 + $0x2a4] sm:$0xf] }
  0xbe   :  { %v4922_v4 = vld [vmem:[#allocation8 + $0x3a4] sm:$0xf] }
  0xbf   :  { %v5584_v11 = vpack.c.bf16 %v423_v8, %v415_v61  ;;  %v5586_v16 = vpack.c.bf16 %v424_v9, %v416_v2  ;;  %v3741_v61 = vor.u32 %v4894_v47, %v3738_v48  ;;  %v3453_v2 = vor.u32 %v4822_v55, %v3450_v56  ;;  %v3818_v47 = vld [vmem:[#allocation8 + $0x370] sm:$0xf0] }
  0xc0   :  { %v3402_v55 = vld [vmem:[#allocation8 + $0x30] sm:$0xf0] }
  0xc1   :  { %v342_v20 = vpop.f32.mrf.mxu2  ;;  %1993 = vmatmul.bf16.vlgmr.msra.gmra.mxu0 %v5584_v11  ;;  %v356_v23 = vpop.f32.mrf.mxu3  ;;  %2007 = vmatmul.bf16.vlgmr.msra.gmra.mxu1 %v5586_v16 }
  0xc2   :  { %v343_v22 = vadd.f32 %v342_v20, %v205_v3  ;;  %2097 = vmatpush.bf16.msra.mxu0 %v3501_v10  ;;  %v368_v25 = vpop.f32.mrf.mxu0  ;;  %v357_v31 = vadd.f32 %v356_v23, %v206_v7  ;;  %2111 = vmatpush.bf16.msra.mxu1 %v3629_v12  ;;  %v382_v32 = vpop.f32.mrf.mxu1  ;;  %v3722_v3 = vld [vmem:[#allocation8 + $0x2b0] sm:$0xf0]  ;;  %v210_v7 = vperm.slane %v5578_v52, 7  ;;  %v3581_v10 = vor.u32 %v4854_v57, %v3578_v58  ;;  %v4818_v12 = vld [vmem:[#allocation8 + $0x64] sm:$0xf] }
  0xc3   :  { %v369_v51 = vadd.f32 %v368_v25, %v207_v24  ;;  %v383_v26 = vadd.f32 %v382_v32, %v208_v27  ;;  %v3725_v20 = vor.u32 %v4890_v62, %v3722_v3  ;;  %v3853_v23 = vor.u32 %v4922_v4, %v3850_v5  ;;  %v4886_v25 = vld [vmem:[#allocation8 + $0x284] sm:$0xf]  ;;  %v3706_v52 = vld [vmem:[#allocation8 + $0x290] sm:$0xf0] }
  0xc4   :  { %v425_v38 = vmax.f32 %v343_v22, 0.0  ;;  %v426_v42 = vmax.f32 %v357_v31, 0.0  ;;  %v3437_v29 = vor.u32 %v4818_v12, %v3434_v13  ;;  %v4918_v31 = vld [vmem:[#allocation8 + $0x384] sm:$0xf]  ;;  %v3530_v57 = vld [vmem:[#allocation8 + $0x130] sm:$0xf0] }
  0xc5   :  { %v419_v6 = vmax.f32 %v369_v51, 0.0  ;;  %v420_v14 = vmax.f32 %v383_v26, 0.0  ;;  %v4814_v32 = vld [vmem:[#allocation8 + $0x44] sm:$0xf]  ;;  %v3802_v4 = vld [vmem:[#allocation8 + $0x350] sm:$0xf0] }
  0xc6   :  { %v5592_v44 = vpack.c.bf16 %v425_v38, %v417_v37  ;;  %2098 = vmatpush.bf16.msra.mxu0 %v3485_v28  ;;  %v5594_v50 = vpack.c.bf16 %v426_v42, %v418_v41  ;;  %2112 = vmatpush.bf16.msra.mxu1 %v3613_v33  ;;  %v3709_v38 = vor.u32 %v4886_v25, %v3706_v52  ;;  %v4842_v26 = vld [vmem:[#allocation8 + $0x124] sm:$0xf]  ;;  %v4010_v12 = vld [vmem:[#allocation8 + $0x4f0] sm:$0xf0] }
  0xc7   :  { %v3421_v51 = vor.u32 %v4814_v32, %v3418_v34  ;;  %v4878_v62 = vld [vmem:[#allocation8 + $0x244] sm:$0xf]  ;;  %v3533_v3 = vor.u32 %v4842_v26, %v3530_v57  ;;  %v3642_v34 = vld [vmem:[#allocation8 + $0x210] sm:$0xf0] }
  0xc8   :  { %2021 = vmatmul.bf16.vlgmr.msra.gmra.mxu2 %v5592_v44  ;;  %2035 = vmatmul.bf16.vlgmr.msra.gmra.mxu3 %v5594_v50  ;;  %v4806_v5 = vld [vmem:[#allocation8 + $0x4] sm:$0xf] }
  0xc9   :  { %2125 = vmatpush.bf16.msra.mxu2 %v3757_v43  ;;  %v396_v60 = vpop.f32.mrf.mxu2  ;;  %2139 = vmatpush.bf16.msra.mxu3 %v3885_v45  ;;  %v410_v63 = vpop.f32.mrf.mxu3  ;;  %v4994_v13 = vld [vmem:[#allocation8 + $0x5e4] sm:$0xf] }
  0xca   :  { %2099 = vmatpush.bf16.msra.mxu0 %v3469_v46  ;;  %v370_v0 = vpop.f32.mrf.mxu0  ;;  %2113 = vmatpush.bf16.msra.mxu1 %v3597_v53  ;;  %v384_v9 = vpop.f32.mrf.mxu1  ;;  %v397_v21 = vadd.f32 %v396_v60, %v209_v59  ;;  %v411_v28 = vadd.f32 %v410_v63, %v210_v7  ;;  %v4914_v46 = vld [vmem:[#allocation8 + $0x364] sm:$0xf]  ;;  %v3549_v53 = vor.u32 %v4846_v35, %v3546_v36  ;;  %v3674_v63 = vld [vmem:[#allocation8 + $0x250] sm:$0xf0] }
  0xcb   :  { %v371_v8 = vadd.f32 %v370_v0, %v207_v24  ;;  %v385_v15 = vadd.f32 %v384_v9, %v208_v27  ;;  %v3834_v27 = vld [vmem:[#allocation8 + $0x390] sm:$0xf0]  ;;  %v4910_v0 = vld [vmem:[#allocation8 + $0x344] sm:$0xf] }
  0xcc   :  { %v421_v41 = vmax.f32 %v397_v21, 0.0  ;;  %v3837_v45 = vor.u32 %v4918_v31, %v3834_v27  ;;  %v422_v48 = vmax.f32 %v411_v28, 0.0  ;;  %v4962_v9 = vld [vmem:[#allocation8 + $0x4e4] sm:$0xf]  ;;  %v3661_v28 = vor.u32 %v4874_v17, %v3658_v18  ;;  %v4122_v31 = vld [vmem:[#allocation8 + $0x5d0] sm:$0xf0] }
  0xcd   :  { %v427_v19 = vmax.f32 %v371_v8, 0.0  ;;  %2126 = vmatpush.bf16.msra.mxu2 %v3741_v61  ;;  %v428_v22 = vmax.f32 %v385_v15, 0.0  ;;  %2140 = vmatpush.bf16.msra.mxu3 %v3869_v1  ;;  %v3821_v61 = vor.u32 %v4914_v46, %v3818_v47  ;;  %v3514_v8 = vld [vmem:[#allocation8 + $0x110] sm:$0xf0]  ;;  %v3805_v15 = vor.u32 %v4910_v0, %v3802_v4  ;;  %v4906_v21 = vld [vmem:[#allocation8 + $0x324] sm:$0xf] }
  0xce   :  { %2100 = vmatpush.bf16.msra.mxu0 %v3453_v2  ;;  %2114 = vmatpush.bf16.msra.mxu1 %v3581_v10  ;;  %v3405_v2 = vor.u32 %v4810_v54, %v3402_v55  ;;  %v3677_v10 = vor.u32 %v4878_v62, %v3674_v63  ;;  %v4958_v52 = vld [vmem:[#allocation8 + $0x4c4] sm:$0xf]  ;;  %v3770_v36 = vld [vmem:[#allocation8 + $0x310] sm:$0xf0] }
  0xcf   :  { %v5600_v24 = vpack.c.bf16 %v427_v19, %v419_v6  ;;  %v5602_v33 = vpack.c.bf16 %v428_v22, %v420_v14  ;;  %v3386_v6 = vld [vmem:[#allocation8 + $0x10] sm:$0xf0]  ;;  %v4870_v32 = vld [vmem:[#allocation8 + $0x204] sm:$0xf] }
  0xd0   :  { %v4138_v14 = vld [vmem:[#allocation8 + $0x5f0] sm:$0xf0]  ;;  %v3389_v19 = vor.u32 %v4806_v5, %v3386_v6  ;;  %v4902_v35 = vld [vmem:[#allocation8 + $0x304] sm:$0xf] }
  0xd1   :  { %2127 = vmatpush.bf16.msra.mxu2 %v3725_v20  ;;  %v398_v37 = vpop.f32.mrf.mxu2  ;;  %2049 = vmatmul.bf16.vlgmr.msrb.gmra.mxu0 %v5600_v24  ;;  %v412_v43 = vpop.f32.mrf.mxu3  ;;  %v3786_v22 = vld [vmem:[#allocation8 + $0x330] sm:$0xf0]  ;;  %v4141_v25 = vor.u32 %v4994_v13, %v4138_v14  ;;  %v4986_v47 = vld [vmem:[#allocation8 + $0x5a4] sm:$0xf] }
  0xd2   :  { %2141 = vmatpush.bf16.msra.mxu3 %v3853_v23  ;;  %v399_v42 = vadd.f32 %v398_v37, %v209_v59  ;;  %2063 = vmatmul.bf16.vlgmr.msrb.gmra.mxu1 %v5602_v33  ;;  %v413_v49 = vadd.f32 %v412_v43, %v210_v7  ;;  %v3693_v59 = vor.u32 %v4882_v39, %v3690_v40  ;;  %v4838_v7 = vld [vmem:[#allocation8 + $0x104] sm:$0xf]  ;;  %v3978_v46 = vld [vmem:[#allocation8 + $0x4b0] sm:$0xf0] }
  0xd3   :  { %2101 = vmatpush.bf16.msra.mxu0 %v3437_v29  ;;  %2115 = vmatpush.bf16.msra.mxu1 %v3565_v30  ;;  %v3517_v20 = vor.u32 %v4838_v7, %v3514_v8  ;;  %v4013_v23 = vor.u32 %v4962_v9, %v4010_v12  ;;  %v3994_v29 = vld [vmem:[#allocation8 + $0x4d0] sm:$0xf0]  ;;  %v4990_v30 = vld [vmem:[#allocation8 + $0x5c4] sm:$0xf]  ;;  %v3789_v27 = vor.u32 %v4906_v21, %v3786_v22 }
  0xd4   :  { %v429_v56 = vmax.f32 %v399_v42, 0.0  ;;  %v430_v58 = vmax.f32 %v413_v49, 0.0  ;;  %v5026_v37 = vld [vmem:[#allocation8 + $0x6e4] sm:$0xf]  ;;  %v3997_v39 = vor.u32 %v4958_v52, %v3994_v29  ;;  %v4125_v40 = vor.u32 %v4990_v30, %v4122_v31  ;;  %v4394_v42 = vld [vmem:[#allocation8 + $0x7f0] sm:$0xf0] }
  0xd5   :  { %2128 = vmatpush.bf16.msra.mxu2 %v3709_v38  ;;  %v4266_v38 = vld [vmem:[#allocation8 + $0x6f0] sm:$0xf0]  ;;  %v4954_v43 = vld [vmem:[#allocation8 + $0x4a4] sm:$0xf]  ;;  %v3773_v49 = vor.u32 %v4902_v35, %v3770_v36 }
  0xd6   :  { %v5606_v60 = vpack.c.bf16 %v429_v56, %v421_v41  ;;  %2142 = vmatpush.bf16.msra.mxu3 %v3837_v45  ;;  %v5608_v1 = vpack.c.bf16 %v430_v58, %v422_v48  ;;  %v5058_v41 = vld [vmem:[#allocation8 + $0x7e4] sm:$0xf]  ;;  %v3645_v45 = vor.u32 %v4870_v32, %v3642_v34  ;;  %v4106_v48 = vld [vmem:[#allocation8 + $0x5b0] sm:$0xf0]  ;;  %v3981_v56 = vor.u32 %v4954_v43, %v3978_v46 }
  0xd7   :  { %2102 = vmatpush.bf16.msra.mxu0 %v3421_v51  ;;  %2116 = vmatpush.bf16.msra.mxu1 %v3549_v53  ;;  %v4269_v51 = vor.u32 %v5026_v37, %v4266_v38  ;;  %v4397_v53 = vor.u32 %v5058_v41, %v4394_v42  ;;  %v5022_v54 = vld [vmem:[#allocation8 + $0x6c4] sm:$0xf]  ;;  %v4250_v55 = vld [vmem:[#allocation8 + $0x6d0] sm:$0xf0]  ;;  %v4109_v26 = vor.u32 %v4986_v47, %v4106_v48 }
  0xd8   :  { %2077 = vmatmul.bf16.vlgmr.msrb.gmra.mxu2 %v5606_v60  ;;  %2091 = vmatmul.bf16.vlgmr.msrb.gmra.mxu3 %v5608_v1  ;;  %v5054_v57 = vld [vmem:[#allocation8 + $0x7c4] sm:$0xf]  ;;  %v4378_v58 = vld [vmem:[#allocation8 + $0x7d0] sm:$0xf0]  ;;  %v4253_v0 = vor.u32 %v5022_v54, %v4250_v55 }
  0xd9   :  { %2129 = vmatpush.bf16.msra.mxu2 %v3693_v59  ;;  %v4950_v59 = vld [vmem:[#allocation8 + $0x484] sm:$0xf]  ;;  %v4090_v63 = vld [vmem:[#allocation8 + $0x590] sm:$0xf0] }
  0xda   :  { %2143 = vmatpush.bf16.msra.mxu3 %v3821_v61  ;;  %v3962_v61 = vld [vmem:[#allocation8 + $0x490] sm:$0xf0]  ;;  %v4982_v62 = vld [vmem:[#allocation8 + $0x584] sm:$0xf] }
  0xdb   :  { %2103 = vmatpush.bf16.msra.mxu0 %v3405_v2  ;;  %2117 = vmatpush.bf16.msra.mxu1 %v3533_v3  ;;  %v4381_v2 = vor.u32 %v5054_v57, %v4378_v58  ;;  %v5018_v3 = vld [vmem:[#allocation8 + $0x6a4] sm:$0xf]  ;;  %v4234_v4 = vld [vmem:[#allocation8 + $0x6b0] sm:$0xf0]  ;;  %v3965_v5 = vor.u32 %v4950_v59, %v3962_v61  ;;  %v4093_v6 = vor.u32 %v4982_v62, %v4090_v63  ;;  %v4837_v57 = vld [vmem:[#allocation8 + $0xf4] sm:$0xf0] }
  0xdc   :  { %v5050_v7 = vld [vmem:[#allocation8 + $0x7a4] sm:$0xf]  ;;  %v4362_v8 = vld [vmem:[#allocation8 + $0x7b0] sm:$0xf0]  ;;  %v4237_v14 = vor.u32 %v5018_v3, %v4234_v4  ;;  %v3632_v58 = vld [vmem:[#allocation8 + $0x1e8] sm:$0xf] }
  0xdd   :  { %2130 = vmatpush.bf16.msra.mxu2 %v3677_v10  ;;  %v4946_v9 = vld [vmem:[#allocation8 + $0x464] sm:$0xf]  ;;  %v3946_v10 = vld [vmem:[#allocation8 + $0x470] sm:$0xf0]  ;;  %v4869_v59 = vld [vmem:[#allocation8 + $0x1f4] sm:$0xf0] }
  0xde   :  { %2144 = vmatpush.bf16.msra.mxu3 %v3805_v15  ;;  %v4978_v12 = vld [vmem:[#allocation8 + $0x564] sm:$0xf]  ;;  %v4074_v13 = vld [vmem:[#allocation8 + $0x570] sm:$0xf0]  ;;  %v4365_v15 = vor.u32 %v5050_v7, %v4362_v8  ;;  %v3488_v7 = vld [vmem:[#allocation8 + $0xc8] sm:$0xf] }
  0xdf   :  { %2104 = vmatpush.bf16.msra.mxu0 %v3389_v19  ;;  %2118 = vmatpush.bf16.msra.mxu1 %v3517_v20  ;;  %v5014_v17 = vld [vmem:[#allocation8 + $0x684] sm:$0xf]  ;;  %v4218_v18 = vld [vmem:[#allocation8 + $0x690] sm:$0xf0]  ;;  %v3949_v19 = vor.u32 %v4946_v9, %v3946_v10  ;;  %v4077_v20 = vor.u32 %v4978_v12, %v4074_v13  ;;  %v4833_v9 = vld [vmem:[#allocation8 + $0xd4] sm:$0xf0] }
  0xe0   :  { %v5046_v21 = vld [vmem:[#allocation8 + $0x784] sm:$0xf]  ;;  %v4346_v22 = vld [vmem:[#allocation8 + $0x790] sm:$0xf0]  ;;  %v4221_v29 = vor.u32 %v5014_v17, %v4218_v18  ;;  %v3616_v10 = vld [vmem:[#allocation8 + $0x1c8] sm:$0xf] }
  0xe1   :  { %2131 = vmatpush.bf16.msra.mxu2 %v3661_v28  ;;  %v4974_v52 = vld [vmem:[#allocation8 + $0x544] sm:$0xf]  ;;  %v4058_v28 = vld [vmem:[#allocation8 + $0x550] sm:$0xf0]  ;;  %v4349_v30 = vor.u32 %v5046_v21, %v4346_v22  ;;  %v4865_v12 = vld [vmem:[#allocation8 + $0x1d4] sm:$0xf0]  ;;  %v3489_v21 = vor.u32 %v4833_v9, %v3488_v7 }
  0xe2   :  { %2145 = vmatpush.bf16.msra.mxu3 %v3789_v27  ;;  %2105 = vmatmul.bf16.vlgmr.msra.gmra.mxu0 %v5584_v11  ;;  %v5010_v31 = vld [vmem:[#allocation8 + $0x664] sm:$0xf]  ;;  %v4202_v27 = vld [vmem:[#allocation8 + $0x670] sm:$0xf0]  ;;  %v4061_v34 = vor.u32 %v4974_v52, %v4058_v28  ;;  %v3617_v22 = vor.u32 %v4865_v12, %v3616_v10  ;;  %v3472_v28 = vld [vmem:[#allocation8 + $0xa8] sm:$0xf] }
  0xe3   :  { %2153 = vmatpush.bf16.msrb.mxu0 %v4013_v23  ;;  %2167 = vmatpush.bf16.msrb.mxu1 %v4141_v25  ;;  %v4942_v23 = vld [vmem:[#allocation8 + $0x444] sm:$0xf]  ;;  %v3930_v25 = vld [vmem:[#allocation8 + $0x450] sm:$0xf0]  ;;  %v4205_v41 = vor.u32 %v5010_v31, %v4202_v27  ;;  %v3600_v27 = vld [vmem:[#allocation8 + $0x1a8] sm:$0xf] }
  0xe4   :  { %2119 = vmatmul.bf16.vlgmr.msra.gmra.mxu1 %v5586_v16  ;;  %v3933_v32 = vor.u32 %v4942_v23, %v3930_v25  ;;  %v5042_v35 = vld [vmem:[#allocation8 + $0x764] sm:$0xf]  ;;  %v4330_v36 = vld [vmem:[#allocation8 + $0x770] sm:$0xf0]  ;;  %v3888_v23 = vld [vmem:[#allocation8 + $0x3e8] sm:$0xf] }
  0xe5   :  { %2132 = vmatpush.bf16.msra.mxu2 %v3645_v45  ;;  %v4938_v37 = vld [vmem:[#allocation8 + $0x424] sm:$0xf]  ;;  %v3914_v38 = vld [vmem:[#allocation8 + $0x430] sm:$0xf0]  ;;  %v4333_v42 = vor.u32 %v5042_v35, %v4330_v36  ;;  %v4933_v25 = vld [vmem:[#allocation8 + $0x3f4] sm:$0xf0] }
  0xe6   :  { %2146 = vmatpush.bf16.msra.mxu3 %v3773_v49  ;;  %v5006_v43 = vld [vmem:[#allocation8 + $0x644] sm:$0xf]  ;;  %v4186_v45 = vld [vmem:[#allocation8 + $0x650] sm:$0xf0]  ;;  %v3917_v47 = vor.u32 %v4938_v37, %v3914_v38  ;;  %v3744_v35 = vld [vmem:[#allocation8 + $0x2c8] sm:$0xf] }
  0xe7   :  { %2154 = vmatpush.bf16.msrb.mxu0 %v3997_v39  ;;  %2168 = vmatpush.bf16.msrb.mxu1 %v4125_v40  ;;  %v4970_v39 = vld [vmem:[#allocation8 + $0x524] sm:$0xf]  ;;  %v4042_v40 = vld [vmem:[#allocation8 + $0x530] sm:$0xf0]  ;;  %v4897_v36 = vld [vmem:[#allocation8 + $0x2d4] sm:$0xf0] }
  0xe8   :  { %2133 = vmatmul.bf16.vlgmr.msra.gmra.mxu2 %v5592_v44  ;;  %v5038_v46 = vld [vmem:[#allocation8 + $0x744] sm:$0xf]  ;;  %v4045_v48 = vor.u32 %v4970_v39, %v4042_v40  ;;  %v4314_v49 = vld [vmem:[#allocation8 + $0x750] sm:$0xf0]  ;;  %v3872_v38 = vld [vmem:[#allocation8 + $0x3c8] sm:$0xf] }
  0xe9   :  { %2181 = vmatpush.bf16.msrb.mxu2 %v4269_v51  ;;  %2147 = vmatmul.bf16.vlgmr.msra.gmra.mxu3 %v5594_v50  ;;  %v4934_v51 = vld [vmem:[#allocation8 + $0x404] sm:$0xf]  ;;  %v4026_v55 = vld [vmem:[#allocation8 + $0x510] sm:$0xf0]  ;;  %v4317_v61 = vor.u32 %v5038_v46, %v4314_v49  ;;  %v4929_v39 = vld [vmem:[#allocation8 + $0x3d4] sm:$0xf0] }
  0xea   :  { %2195 = vmatpush.bf16.msrb.mxu3 %v4397_v53  ;;  %v3898_v53 = vld [vmem:[#allocation8 + $0x410] sm:$0xf0]  ;;  %v4966_v54 = vld [vmem:[#allocation8 + $0x504] sm:$0xf]  ;;  %v4857_v46 = vld [vmem:[#allocation8 + $0x194] sm:$0xf0] }
  0xeb   :  { %2155 = vmatpush.bf16.msrb.mxu0 %v3981_v56  ;;  %2169 = vmatpush.bf16.msrb.mxu1 %v4109_v26  ;;  %v3504_v56 = vld [vmem:[#allocation8 + $0xe8] sm:$0xf]  ;;  %v4189_v26 = vor.u32 %v5006_v43, %v4186_v45  ;;  %v5002_v62 = vld [vmem:[#allocation8 + $0x624] sm:$0xf]  ;;  %v4170_v63 = vld [vmem:[#allocation8 + $0x630] sm:$0xf0]  ;;  %v3745_v43 = vor.u32 %v4897_v36, %v3744_v35 }
  0xec   :  { %v5034_v3 = vld [vmem:[#allocation8 + $0x724] sm:$0xf]  ;;  %v4298_v4 = vld [vmem:[#allocation8 + $0x730] sm:$0xf0]  ;;  %v4173_v8 = vor.u32 %v5002_v62, %v4170_v63  ;;  %v3584_v45 = vld [vmem:[#allocation8 + $0x188] sm:$0xf] }
  0xed   :  { %2182 = vmatpush.bf16.msrb.mxu2 %v4253_v0  ;;  %v3901_v0 = vor.u32 %v4934_v51, %v3898_v53  ;;  %v4301_v13 = vor.u32 %v5034_v3, %v4298_v4  ;;  %v5030_v17 = vld [vmem:[#allocation8 + $0x704] sm:$0xf]  ;;  %v4282_v18 = vld [vmem:[#allocation8 + $0x710] sm:$0xf0]  ;;  %v4893_v49 = vld [vmem:[#allocation8 + $0x2b4] sm:$0xf0] }
  0xee   :  { %2196 = vmatpush.bf16.msrb.mxu3 %v4381_v2  ;;  %v4029_v2 = vor.u32 %v4966_v54, %v4026_v55  ;;  %v3856_v53 = vld [vmem:[#allocation8 + $0x3a8] sm:$0xf]  ;;  %v4925_v54 = vld [vmem:[#allocation8 + $0x3b4] sm:$0xf0]  ;;  %v3585_v55 = vor.u32 %v4857_v46, %v3584_v45 }
  0xef   :  { %2156 = vmatpush.bf16.msrb.mxu0 %v3965_v5  ;;  %2170 = vmatpush.bf16.msrb.mxu1 %v4093_v6  ;;  %v3505_v5 = vor.u32 %v4837_v57, %v3504_v56  ;;  %v3633_v6 = vor.u32 %v4869_v59, %v3632_v58  ;;  %v3440_v56 = vld [vmem:[#allocation8 + $0x68] sm:$0xf]  ;;  %v4853_v59 = vld [vmem:[#allocation8 + $0x174] sm:$0xf0] }
  0xf0   :  { %v3568_v58 = vld [vmem:[#allocation8 + $0x168] sm:$0xf]  ;;  %v4889_v63 = vld [vmem:[#allocation8 + $0x294] sm:$0xf0] }
  0xf1   :  { %2183 = vmatpush.bf16.msrb.mxu2 %v4237_v14  ;;  %v4998_v14 = vld [vmem:[#allocation8 + $0x604] sm:$0xf]  ;;  %v3712_v62 = vld [vmem:[#allocation8 + $0x288] sm:$0xf]  ;;  %v4921_v3 = vld [vmem:[#allocation8 + $0x394] sm:$0xf0]  ;;  %v3569_v4 = vor.u32 %v4853_v59, %v3568_v58 }
  0xf2   :  { %2197 = vmatpush.bf16.msrb.mxu3 %v4365_v15  ;;  %v4154_v15 = vld [vmem:[#allocation8 + $0x610] sm:$0xf0]  ;;  %v3713_v7 = vor.u32 %v4889_v63, %v3712_v62  ;;  %v4849_v9 = vld [vmem:[#allocation8 + $0x154] sm:$0xf0]  ;;  %v3696_v12 = vld [vmem:[#allocation8 + $0x268] sm:$0xf] }
  0xf3   :  { %2157 = vmatpush.bf16.msrb.mxu0 %v3949_v19  ;;  %2171 = vmatpush.bf16.msrb.mxu1 %v4077_v20  ;;  %v3760_v19 = vld [vmem:[#allocation8 + $0x2e8] sm:$0xf]  ;;  %v4901_v20 = vld [vmem:[#allocation8 + $0x2f4] sm:$0xf0]  ;;  %v4157_v52 = vor.u32 %v4998_v14, %v4154_v15 }
  0xf4   :  { %v3761_v31 = vor.u32 %v4901_v20, %v3760_v19  ;;  %v3824_v15 = vld [vmem:[#allocation8 + $0x368] sm:$0xf]  ;;  %v4813_v20 = vld [vmem:[#allocation8 + $0x34] sm:$0xf0] }
  0xf5   :  { %2184 = vmatpush.bf16.msrb.mxu2 %v4221_v29  ;;  %v4829_v29 = vld [vmem:[#allocation8 + $0xb4] sm:$0xf0]  ;;  %v3408_v19 = vld [vmem:[#allocation8 + $0x28] sm:$0xf] }
  0xf6   :  { %2198 = vmatpush.bf16.msrb.mxu3 %v4349_v30  ;;  %v4285_v30 = vor.u32 %v5030_v17, %v4282_v18  ;;  %v3473_v37 = vor.u32 %v4829_v29, %v3472_v28  ;;  %v4917_v17 = vld [vmem:[#allocation8 + $0x374] sm:$0xf0]  ;;  %v3409_v29 = vor.u32 %v4813_v20, %v3408_v19  ;;  %v3520_v35 = vld [vmem:[#allocation8 + $0x108] sm:$0xf] }
  0xf7   :  { %2158 = vmatpush.bf16.msrb.mxu0 %v3933_v32  ;;  %2172 = vmatpush.bf16.msrb.mxu1 %v4061_v34  ;;  %v4861_v32 = vld [vmem:[#allocation8 + $0x1b4] sm:$0xf0]  ;;  %v3889_v34 = vor.u32 %v4933_v25, %v3888_v23  ;;  %v3825_v25 = vor.u32 %v4917_v17, %v3824_v15  ;;  %v3648_v59 = vld [vmem:[#allocation8 + $0x208] sm:$0xf] }
  0xf8   :  { %v3601_v40 = vor.u32 %v4861_v32, %v3600_v27  ;;  %v4845_v23 = vld [vmem:[#allocation8 + $0x134] sm:$0xf0]  ;;  %v3392_v27 = vld [vmem:[#allocation8 + $0x8] sm:$0xf] }
  0xf9   :  { %2185 = vmatpush.bf16.msrb.mxu2 %v4205_v41  ;;  %v3456_v41 = vld [vmem:[#allocation8 + $0x88] sm:$0xf]  ;;  %v4881_v28 = vld [vmem:[#allocation8 + $0x254] sm:$0xf0] }
  0xfa   :  { %2199 = vmatpush.bf16.msrb.mxu3 %v4333_v42  ;;  %v4825_v42 = vld [vmem:[#allocation8 + $0x94] sm:$0xf0]  ;;  %v3776_v62 = vld [vmem:[#allocation8 + $0x308] sm:$0xf] }
  0xfb   :  { %2159 = vmatpush.bf16.msrb.mxu0 %v3917_v47  ;;  %2173 = vmatpush.bf16.msrb.mxu1 %v4045_v48  ;;  %v3873_v47 = vor.u32 %v4929_v39, %v3872_v38  ;;  %v3728_v48 = vld [vmem:[#allocation8 + $0x2a8] sm:$0xf]  ;;  %v3457_v51 = vor.u32 %v4825_v42, %v3456_v41  ;;  %v4841_v36 = vld [vmem:[#allocation8 + $0x114] sm:$0xf0] }
  0xfc   :  { %v3729_v57 = vor.u32 %v4893_v49, %v3728_v48  ;;  %v4016_v38 = vld [vmem:[#allocation8 + $0x4e8] sm:$0xf]  ;;  %v4965_v39 = vld [vmem:[#allocation8 + $0x4f4] sm:$0xf0]  ;;  %v3521_v49 = vor.u32 %v4841_v36, %v3520_v35 }
  0xfd   :  { %2186 = vmatpush.bf16.msrb.mxu2 %v4189_v26  ;;  %v4821_v26 = vld [vmem:[#allocation8 + $0x74] sm:$0xf0]  ;;  %v4256_v17 = vld [vmem:[#allocation8 + $0x6c8] sm:$0xf] }
  0xfe   :  { %2200 = vmatpush.bf16.msrb.mxu3 %v4317_v61  ;;  %v3857_v61 = vor.u32 %v4925_v54, %v3856_v53  ;;  %v4997_v42 = vld [vmem:[#allocation8 + $0x5f4] sm:$0xf0]  ;;  %v4000_v53 = vld [vmem:[#allocation8 + $0x4c8] sm:$0xf] }
  0xff   :  { %2160 = vmatpush.bf16.msrb.mxu0 %v3901_v0  ;;  %2174 = vmatpush.bf16.msrb.mxu1 %v4029_v2  ;;  %v3441_v0 = vor.u32 %v4821_v26, %v3440_v56  ;;  %v3840_v2 = vld [vmem:[#allocation8 + $0x388] sm:$0xf]  ;;  %v4877_v45 = vld [vmem:[#allocation8 + $0x234] sm:$0xf0] }
 0x100   :  { %v3841_v10 = vor.u32 %v4921_v3, %v3840_v2  ;;  %v4909_v48 = vld [vmem:[#allocation8 + $0x334] sm:$0xf0]  ;;  %v4128_v26 = vld [vmem:[#allocation8 + $0x5c8] sm:$0xf] }
 0x101   :  { %2187 = vmatpush.bf16.msrb.mxu2 %v4173_v8  ;;  %v3552_v8 = vld [vmem:[#allocation8 + $0x148] sm:$0xf]  ;;  %v4961_v56 = vld [vmem:[#allocation8 + $0x4d4] sm:$0xf0] }
 0x102   :  { %2201 = vmatpush.bf16.msrb.mxu3 %v4301_v13  ;;  %2161 = vmatmul.bf16.vlgmr.msrb.gmra.mxu0 %v5600_v24  ;;  %v4885_v13 = vld [vmem:[#allocation8 + $0x274] sm:$0xf0]  ;;  %v3553_v18 = vor.u32 %v4849_v9, %v3552_v8  ;;  %v4001_v3 = vor.u32 %v4961_v56, %v4000_v53  ;;  %v3984_v8 = vld [vmem:[#allocation8 + $0x4a8] sm:$0xf] }
 0x103   :  { %2209 = vmatpush.bf16.msra.mxu0 %v3505_v5  ;;  %2223 = vmatpush.bf16.msra.mxu1 %v3633_v6  ;;  %v3424_v5 = vld [vmem:[#allocation8 + $0x48] sm:$0xf]  ;;  %v4817_v6 = vld [vmem:[#allocation8 + $0x54] sm:$0xf0] }
 0x104   :  { %2175 = vmatmul.bf16.vlgmr.msrb.gmra.mxu1 %v5602_v33  ;;  %v3425_v14 = vor.u32 %v4817_v6, %v3424_v5  ;;  %v4905_v63 = vld [vmem:[#allocation8 + $0x314] sm:$0xf0]  ;;  %v4384_v20 = vld [vmem:[#allocation8 + $0x7c8] sm:$0xf] }
 0x105   :  { %2188 = vmatpush.bf16.msrb.mxu2 %v4157_v52  ;;  %v3680_v52 = vld [vmem:[#allocation8 + $0x248] sm:$0xf]  ;;  %v5029_v2 = vld [vmem:[#allocation8 + $0x6f4] sm:$0xf0] }
 0x106   :  { %2202 = vmatpush.bf16.msrb.mxu3 %v4285_v30  ;;  %v3808_v30 = vld [vmem:[#allocation8 + $0x348] sm:$0xf]  ;;  %v5061_v5 = vld [vmem:[#allocation8 + $0x7f4] sm:$0xf0] }
 0x107   :  { %2210 = vmatpush.bf16.msra.mxu0 %v3489_v21  ;;  %2224 = vmatpush.bf16.msra.mxu1 %v3617_v22  ;;  %v3697_v21 = vor.u32 %v4885_v13, %v3696_v12  ;;  %v3536_v22 = vld [vmem:[#allocation8 + $0x128] sm:$0xf]  ;;  %v4957_v9 = vld [vmem:[#allocation8 + $0x4b4] sm:$0xf0] }
 0x108   :  { %2189 = vmatmul.bf16.vlgmr.msrb.gmra.mxu2 %v5606_v60  ;;  %v3537_v32 = vor.u32 %v4845_v23, %v3536_v22  ;;  %v4112_v13 = vld [vmem:[#allocation8 + $0x5a8] sm:$0xf]  ;;  %v3985_v19 = vor.u32 %v4957_v9, %v3984_v8  ;;  %v5053_v35 = vld [vmem:[#allocation8 + $0x7b4] sm:$0xf0] }
 0x109   :  { %2237 = vmatpush.bf16.msra.mxu2 %v3761_v31  ;;  %2203 = vmatmul.bf16.vlgmr.msrb.gmra.mxu3 %v5608_v1  ;;  %v4913_v31 = vld [vmem:[#allocation8 + $0x354] sm:$0xf0]  ;;  %v3968_v23 = vld [vmem:[#allocation8 + $0x488] sm:$0xf] }
 0x10a   :  { %2251 = vmatpush.bf16.msra.mxu3 %v3889_v34  ;;  %v4809_v34 = vld [vmem:[#allocation8 + $0x14] sm:$0xf0]  ;;  %v3809_v41 = vor.u32 %v4913_v31, %v3808_v30  ;;  %v4240_v31 = vld [vmem:[#allocation8 + $0x6a8] sm:$0xf] }
 0x10b   :  { %2211 = vmatpush.bf16.msra.mxu0 %v3473_v37  ;;  %2225 = vmatpush.bf16.msra.mxu1 %v3601_v40  ;;  %v3681_v37 = vor.u32 %v4881_v28, %v3680_v52  ;;  %v4144_v40 = vld [vmem:[#allocation8 + $0x5e8] sm:$0xf]  ;;  %v3393_v46 = vor.u32 %v4809_v34, %v3392_v27  ;;  %v5021_v27 = vld [vmem:[#allocation8 + $0x6b4] sm:$0xf0] }
 0x10c   :  { %v4145_v54 = vor.u32 %v4997_v42, %v4144_v40  ;;  %v4096_v28 = vld [vmem:[#allocation8 + $0x588] sm:$0xf]  ;;  %v4945_v53 = vld [vmem:[#allocation8 + $0x454] sm:$0xf0] }
 0x10d   :  { %2238 = vmatpush.bf16.msra.mxu2 %v3745_v43  ;;  %v3664_v43 = vld [vmem:[#allocation8 + $0x228] sm:$0xf]  ;;  %v4977_v56 = vld [vmem:[#allocation8 + $0x554] sm:$0xf0] }
 0x10e   :  { %2252 = vmatpush.bf16.msra.mxu3 %v3873_v47  ;;  %v3792_v47 = vld [vmem:[#allocation8 + $0x328] sm:$0xf]  ;;  %v5009_v8 = vld [vmem:[#allocation8 + $0x654] sm:$0xf0] }
 0x10f   :  { %2212 = vmatpush.bf16.msra.mxu0 %v3457_v51  ;;  %2226 = vmatpush.bf16.msra.mxu1 %v3585_v55  ;;  %v4017_v51 = vor.u32 %v4965_v39, %v4016_v38  ;;  %v3665_v55 = vor.u32 %v4877_v45, %v3664_v43  ;;  %v3793_v58 = vor.u32 %v4909_v48, %v3792_v47  ;;  %v4368_v34 = vld [vmem:[#allocation8 + $0x7a8] sm:$0xf]  ;;  %v4949_v38 = vld [vmem:[#allocation8 + $0x474] sm:$0xf0] }
 0x110   :  { %v4241_v39 = vor.u32 %v5021_v27, %v4240_v31  ;;  %v4080_v40 = vld [vmem:[#allocation8 + $0x568] sm:$0xf]  ;;  %v4369_v42 = vor.u32 %v5053_v35, %v4368_v34  ;;  %v5017_v45 = vld [vmem:[#allocation8 + $0x694] sm:$0xf0]  ;;  %v4831_v34 = vld [vmem:[#allocation8 + $0xcc] sm:$0xf] }
 0x111   :  { %2239 = vmatpush.bf16.msra.mxu2 %v3729_v57  ;;  %v4993_v57 = vld [vmem:[#allocation8 + $0x5d4] sm:$0xf0]  ;;  %v4224_v43 = vld [vmem:[#allocation8 + $0x688] sm:$0xf] }
 0x112   :  { %2253 = vmatpush.bf16.msra.mxu3 %v3857_v61  ;;  %v4873_v61 = vld [vmem:[#allocation8 + $0x214] sm:$0xf0]  ;;  %v4129_v6 = vor.u32 %v4993_v57, %v4128_v26  ;;  %v4352_v47 = vld [vmem:[#allocation8 + $0x788] sm:$0xf] }
 0x113   :  { %2213 = vmatpush.bf16.msra.mxu0 %v3441_v0  ;;  %2227 = vmatpush.bf16.msra.mxu1 %v3569_v4  ;;  %v4272_v0 = vld [vmem:[#allocation8 + $0x6e8] sm:$0xf]  ;;  %v5049_v48 = vld [vmem:[#allocation8 + $0x794] sm:$0xf0] }
 0x114   :  { %v4400_v4 = vld [vmem:[#allocation8 + $0x7e8] sm:$0xf]  ;;  %v4273_v12 = vor.u32 %v5029_v2, %v4272_v0  ;;  %v4353_v26 = vor.u32 %v5049_v48, %v4352_v47  ;;  %v4941_v2 = vld [vmem:[#allocation8 + $0x434] sm:$0xf0]  ;;  %v3762_v47 = vld [vmem:[#allocation8 + $0x2f8] sm:$0xf0] }
 0x115   :  { %2240 = vmatpush.bf16.msra.mxu2 %v3713_v7  ;;  %v3649_v7 = vor.u32 %v4873_v61, %v3648_v59  ;;  %v4401_v15 = vor.u32 %v5061_v5, %v4400_v4  ;;  %v4208_v57 = vld [vmem:[#allocation8 + $0x668] sm:$0xf]  ;;  %v4973_v5 = vld [vmem:[#allocation8 + $0x534] sm:$0xf0] }
 0x116   :  { %2254 = vmatpush.bf16.msra.mxu3 %v3841_v10  ;;  %v3777_v10 = vor.u32 %v4905_v63, %v3776_v62  ;;  %v4336_v61 = vld [vmem:[#allocation8 + $0x768] sm:$0xf]  ;;  %v5045_v62 = vld [vmem:[#allocation8 + $0x774] sm:$0xf0] }
 0x117   :  { %2214 = vmatpush.bf16.msra.mxu0 %v3425_v14  ;;  %2228 = vmatpush.bf16.msra.mxu1 %v3553_v18  ;;  %v4989_v14 = vld [vmem:[#allocation8 + $0x5b4] sm:$0xf0]  ;;  %v3920_v0 = vld [vmem:[#allocation8 + $0x428] sm:$0xf] }
 0x118   :  { %v5025_v18 = vld [vmem:[#allocation8 + $0x6d4] sm:$0xf0]  ;;  %v4113_v22 = vor.u32 %v4989_v14, %v4112_v13  ;;  %v4048_v4 = vld [vmem:[#allocation8 + $0x528] sm:$0xf]  ;;  %v3921_v9 = vor.u32 %v4941_v2, %v3920_v0  ;;  %v4927_v2 = vld [vmem:[#allocation8 + $0x3cc] sm:$0xf] }
 0x119   :  { %2241 = vmatpush.bf16.msra.mxu2 %v3697_v21  ;;  %v5057_v21 = vld [vmem:[#allocation8 + $0x7d4] sm:$0xf0]  ;;  %v4257_v52 = vor.u32 %v5025_v18, %v4256_v17  ;;  %v3904_v13 = vld [vmem:[#allocation8 + $0x408] sm:$0xf]  ;;  %v4049_v14 = vor.u32 %v4973_v5, %v4048_v4  ;;  %v4823_v5 = vld [vmem:[#allocation8 + $0x8c] sm:$0xf] }
 0x11a   :  { %2255 = vmatpush.bf16.msra.mxu3 %v3825_v25  ;;  %v4953_v25 = vld [vmem:[#allocation8 + $0x494] sm:$0xf0]  ;;  %v4385_v30 = vor.u32 %v5057_v21, %v4384_v20  ;;  %v4032_v17 = vld [vmem:[#allocation8 + $0x508] sm:$0xf]  ;;  %v4835_v20 = vld [vmem:[#allocation8 + $0xec] sm:$0xf] }
 0x11b   :  { %2215 = vmatpush.bf16.msra.mxu0 %v3409_v29  ;;  %2229 = vmatpush.bf16.msra.mxu1 %v3537_v32  ;;  %v4985_v29 = vld [vmem:[#allocation8 + $0x594] sm:$0xf0]  ;;  %v3969_v32 = vor.u32 %v4953_v25, %v3968_v23  ;;  %v3506_v21 = vld [vmem:[#allocation8 + $0xf8] sm:$0xf0] }
 0x11c   :  { %v4097_v36 = vor.u32 %v4985_v29, %v4096_v28  ;;  %v4969_v18 = vld [vmem:[#allocation8 + $0x514] sm:$0xf0]  ;;  %v3634_v25 = vld [vmem:[#allocation8 + $0x1f8] sm:$0xf0] }
 0x11d   :  { %2242 = vmatpush.bf16.msra.mxu2 %v3681_v37  ;;  %v3952_v37 = vld [vmem:[#allocation8 + $0x468] sm:$0xf]  ;;  %v5005_v28 = vld [vmem:[#allocation8 + $0x634] sm:$0xf0]  ;;  %v4033_v27 = vor.u32 %v4969_v18, %v4032_v17  ;;  %v3858_v17 = vld [vmem:[#allocation8 + $0x3b8] sm:$0xf0] }
 0x11e   :  { %2256 = vmatpush.bf16.msra.mxu3 %v3809_v41  ;;  %v4981_v41 = vld [vmem:[#allocation8 + $0x574] sm:$0xf0] }
 0x11f   :  { %2216 = vmatpush.bf16.msra.mxu0 %v3393_v46  ;;  %2230 = vmatpush.bf16.msra.mxu1 %v3521_v49  ;;  %v3953_v46 = vor.u32 %v4949_v38, %v3952_v37  ;;  %v4081_v49 = vor.u32 %v4981_v41, %v4080_v40  ;;  %v5037_v31 = vld [vmem:[#allocation8 + $0x734] sm:$0xf0]  ;;  %v3490_v37 = vld [vmem:[#allocation8 + $0xd8] sm:$0xf0]  ;;  %v4863_v38 = vld [vmem:[#allocation8 + $0x1cc] sm:$0xf] }
 0x120   :  { %v4160_v41 = vld [vmem:[#allocation8 + $0x608] sm:$0xf]  ;;  %v3493_v48 = vor.u32 %v4831_v34, %v3490_v37  ;;  %v4815_v34 = vld [vmem:[#allocation8 + $0x4c] sm:$0xf] }
 0x121   :  { %2243 = vmatpush.bf16.msra.mxu2 %v3665_v55  ;;  %v4064_v55 = vld [vmem:[#allocation8 + $0x548] sm:$0xf]  ;;  %v4847_v37 = vld [vmem:[#allocation8 + $0x14c] sm:$0xf] }
 0x122   :  { %2257 = vmatpush.bf16.msra.mxu3 %v3793_v58  ;;  %2217 = vmatmul.bf16.vlgmr.msra.gmra.mxu0 %v5584_v11  ;;  %v5013_v58 = vld [vmem:[#allocation8 + $0x674] sm:$0xf0]  ;;  %v4065_v63 = vor.u32 %v4977_v56, %v4064_v55  ;;  %v4827_v55 = vld [vmem:[#allocation8 + $0xac] sm:$0xf]  ;;  %v3474_v56 = vld [vmem:[#allocation8 + $0xb8] sm:$0xf0] }
 0x123   :  { %2265 = vmatpush.bf16.msrb.mxu0 %v4017_v51  ;;  %2279 = vmatpush.bf16.msrb.mxu1 %v4145_v54  ;;  %v3936_v51 = vld [vmem:[#allocation8 + $0x448] sm:$0xf]  ;;  %v4225_v54 = vor.u32 %v5017_v45, %v4224_v43  ;;  %v5033_v45 = vld [vmem:[#allocation8 + $0x714] sm:$0xf0]  ;;  %v3477_v0 = vor.u32 %v4827_v55, %v3474_v56  ;;  %v4879_v56 = vld [vmem:[#allocation8 + $0x24c] sm:$0xf] }
 0x124   :  { %2231 = vmatmul.bf16.vlgmr.msra.gmra.mxu1 %v5586_v16  ;;  %v3937_v59 = vor.u32 %v4945_v53, %v3936_v51  ;;  %v4288_v43 = vld [vmem:[#allocation8 + $0x708] sm:$0xf]  ;;  %v3890_v51 = vld [vmem:[#allocation8 + $0x3f8] sm:$0xf0] }
 0x125   :  { %2244 = vmatpush.bf16.msra.mxu2 %v3649_v7  ;;  %v4192_v7 = vld [vmem:[#allocation8 + $0x648] sm:$0xf] }
 0x126   :  { %2258 = vmatpush.bf16.msra.mxu3 %v3777_v10  ;;  %v4320_v10 = vld [vmem:[#allocation8 + $0x748] sm:$0xf] }
 0x127   :  { %2266 = vmatpush.bf16.msrb.mxu0 %v4001_v3  ;;  %2280 = vmatpush.bf16.msrb.mxu1 %v4129_v6  ;;  %v4209_v3 = vor.u32 %v5013_v58, %v4208_v57  ;;  %v4337_v6 = vor.u32 %v5045_v62, %v4336_v61  ;;  %v4859_v58 = vld [vmem:[#allocation8 + $0x1ac] sm:$0xf] }
 0x128   :  { %2245 = vmatmul.bf16.vlgmr.msra.gmra.mxu2 %v5592_v44  ;;  %v4895_v62 = vld [vmem:[#allocation8 + $0x2cc] sm:$0xf] }
 0x129   :  { %2293 = vmatpush.bf16.msrb.mxu2 %v4273_v12  ;;  %2259 = vmatmul.bf16.vlgmr.msra.gmra.mxu3 %v5594_v50  ;;  %v5041_v12 = vld [vmem:[#allocation8 + $0x754] sm:$0xf0] }
 0x12a   :  { %2307 = vmatpush.bf16.msrb.mxu3 %v4401_v15  ;;  %v4937_v15 = vld [vmem:[#allocation8 + $0x414] sm:$0xf0]  ;;  %v4321_v23 = vor.u32 %v5041_v12, %v4320_v10  ;;  %v4891_v12 = vld [vmem:[#allocation8 + $0x2ac] sm:$0xf] }
 0x12b   :  { %2267 = vmatpush.bf16.msrb.mxu0 %v3985_v19  ;;  %2281 = vmatpush.bf16.msrb.mxu1 %v4113_v22  ;;  %v4193_v19 = vor.u32 %v5009_v8, %v4192_v7  ;;  %v4867_v22 = vld [vmem:[#allocation8 + $0x1ec] sm:$0xf]  ;;  %v3905_v29 = vor.u32 %v4937_v15, %v3904_v13  ;;  %v3730_v13 = vld [vmem:[#allocation8 + $0x2b8] sm:$0xf0] }
 0x12c   :  { %v3637_v35 = vor.u32 %v4867_v22, %v3634_v25  ;;  %v4855_v8 = vld [vmem:[#allocation8 + $0x18c] sm:$0xf] }
 0x12d   :  { %2294 = vmatpush.bf16.msrb.mxu2 %v4257_v52  ;;  %v4176_v52 = vld [vmem:[#allocation8 + $0x628] sm:$0xf]  ;;  %v4923_v15 = vld [vmem:[#allocation8 + $0x3ac] sm:$0xf] }
 0x12e   :  { %2308 = vmatpush.bf16.msrb.mxu3 %v4385_v30  ;;  %v4304_v30 = vld [vmem:[#allocation8 + $0x728] sm:$0xf]  ;;  %v4851_v22 = vld [vmem:[#allocation8 + $0x16c] sm:$0xf]  ;;  %v3861_v25 = vor.u32 %v4923_v15, %v3858_v17 }
 0x12f   :  { %2268 = vmatpush.bf16.msrb.mxu0 %v3969_v32  ;;  %2282 = vmatpush.bf16.msrb.mxu1 %v4097_v36  ;;  %v3509_v32 = vor.u32 %v4835_v20, %v3506_v21  ;;  %v4177_v36 = vor.u32 %v5005_v28, %v4176_v52  ;;  %v4305_v40 = vor.u32 %v5037_v31, %v4304_v30  ;;  %v3442_v20 = vld [vmem:[#allocation8 + $0x78] sm:$0xf0]  ;;  %v4887_v52 = vld [vmem:[#allocation8 + $0x28c] sm:$0xf] }
 0x130   :  { %v3733_v21 = vor.u32 %v4891_v12, %v3730_v13  ;;  %v3714_v28 = vld [vmem:[#allocation8 + $0x298] sm:$0xf0]  ;;  %v4919_v30 = vld [vmem:[#allocation8 + $0x38c] sm:$0xf] }
 0x131   :  { %2295 = vmatpush.bf16.msrb.mxu2 %v4241_v39  ;;  %v3618_v39 = vld [vmem:[#allocation8 + $0x1d8] sm:$0xf0]  ;;  %v4875_v12 = vld [vmem:[#allocation8 + $0x22c] sm:$0xf] }
 0x132   :  { %2309 = vmatpush.bf16.msrb.mxu3 %v4369_v42  ;;  %v5001_v42 = vld [vmem:[#allocation8 + $0x614] sm:$0xf0]  ;;  %v3621_v53 = vor.u32 %v4863_v38, %v3618_v39  ;;  %v3842_v31 = vld [vmem:[#allocation8 + $0x398] sm:$0xf0]  ;;  %v4907_v17 = vld [vmem:[#allocation8 + $0x32c] sm:$0xf] }
 0x133   :  { %2269 = vmatpush.bf16.msrb.mxu0 %v3953_v46  ;;  %2283 = vmatpush.bf16.msrb.mxu1 %v4081_v49  ;;  %v4899_v46 = vld [vmem:[#allocation8 + $0x2ec] sm:$0xf]  ;;  %v3554_v38 = vld [vmem:[#allocation8 + $0x158] sm:$0xf0]  ;;  %v3845_v39 = vor.u32 %v4919_v30, %v3842_v31 }
 0x134   :  { %v4931_v49 = vld [vmem:[#allocation8 + $0x3ec] sm:$0xf]  ;;  %v3765_v57 = vor.u32 %v4899_v46, %v3762_v47  ;;  %v3557_v46 = vor.u32 %v4847_v37, %v3554_v38  ;;  %v3666_v13 = vld [vmem:[#allocation8 + $0x238] sm:$0xf0] }
 0x135   :  { %2296 = vmatpush.bf16.msrb.mxu2 %v4225_v54  ;;  %v4161_v54 = vor.u32 %v5001_v42, %v4160_v41  ;;  %v3893_v61 = vor.u32 %v4931_v49, %v3890_v51  ;;  %v3698_v41 = vld [vmem:[#allocation8 + $0x278] sm:$0xf0]  ;;  %v4811_v47 = vld [vmem:[#allocation8 + $0x2c] sm:$0xf] }
 0x136   :  { %2310 = vmatpush.bf16.msrb.mxu3 %v4353_v26  ;;  %v4289_v26 = vor.u32 %v5033_v45, %v4288_v43  ;;  %v4915_v43 = vld [vmem:[#allocation8 + $0x36c] sm:$0xf]  ;;  %v3826_v45 = vld [vmem:[#allocation8 + $0x378] sm:$0xf0] }
 0x137   :  { %2270 = vmatpush.bf16.msrb.mxu0 %v3937_v59  ;;  %2284 = vmatpush.bf16.msrb.mxu1 %v4065_v63  ;;  %v3602_v59 = vld [vmem:[#allocation8 + $0x1b8] sm:$0xf0]  ;;  %v4843_v51 = vld [vmem:[#allocation8 + $0x12c] sm:$0xf]  ;;  %v3829_v55 = vor.u32 %v4915_v43, %v3826_v45 }
 0x138   :  { %v3746_v63 = vld [vmem:[#allocation8 + $0x2d8] sm:$0xf0]  ;;  %v3605_v4 = vor.u32 %v4859_v58, %v3602_v59  ;;  %v4911_v58 = vld [vmem:[#allocation8 + $0x34c] sm:$0xf] }
 0x139   :  { %2297 = vmatpush.bf16.msrb.mxu2 %v4209_v3  ;;  %v3874_v3 = vld [vmem:[#allocation8 + $0x3d8] sm:$0xf0]  ;;  %v3749_v7 = vor.u32 %v4895_v62, %v3746_v63  ;;  %v4871_v30 = vld [vmem:[#allocation8 + $0x20c] sm:$0xf] }
 0x13a   :  { %2311 = vmatpush.bf16.msrb.mxu3 %v4337_v6  ;;  %v3458_v6 = vld [vmem:[#allocation8 + $0x98] sm:$0xf0]  ;;  %v3877_v10 = vor.u32 %v4927_v2, %v3874_v3  ;;  %v4955_v43 = vld [vmem:[#allocation8 + $0x4ac] sm:$0xf] }
 0x13b   :  { %2271 = vmatpush.bf16.msrb.mxu0 %v3921_v9  ;;  %2285 = vmatpush.bf16.msrb.mxu1 %v4049_v14  ;;  %v3586_v9 = vld [vmem:[#allocation8 + $0x198] sm:$0xf0]  ;;  %v3461_v14 = vor.u32 %v4823_v5, %v3458_v6  ;;  %v4995_v6 = vld [vmem:[#allocation8 + $0x5ec] sm:$0xf] }
 0x13c   :  { %v3589_v18 = vor.u32 %v4855_v8, %v3586_v9  ;;  %v3810_v59 = vld [vmem:[#allocation8 + $0x358] sm:$0xf0] }
 0x13d   :  { %2298 = vmatpush.bf16.msrb.mxu2 %v4193_v19  ;;  %v4819_v19 = vld [vmem:[#allocation8 + $0x6c] sm:$0xf]  ;;  %v3394_v63 = vld [vmem:[#allocation8 + $0x18] sm:$0xf0]  ;;  %v3813_v9 = vor.u32 %v4911_v58, %v3810_v59 }
 0x13e   :  { %2312 = vmatpush.bf16.msrb.mxu3 %v4321_v23  ;;  %v3570_v23 = vld [vmem:[#allocation8 + $0x178] sm:$0xf0]  ;;  %v5055_v58 = vld [vmem:[#allocation8 + $0x7cc] sm:$0xf] }
 0x13f   :  { %2272 = vmatpush.bf16.msrb.mxu0 %v3905_v29  ;;  %2286 = vmatpush.bf16.msrb.mxu1 %v4033_v27  ;;  %v3445_v29 = vor.u32 %v4819_v19, %v3442_v20  ;;  %v5628_v27 = vpop.f32.mrf.mxu0  ;;  %v3522_v2 = vld [vmem:[#allocation8 + $0x118] sm:$0xf0] }
 0x140   :  { %v4018_v5 = vld [vmem:[#allocation8 + $0x4f8] sm:$0xf0] }
 0x141   :  { %2299 = vmatpush.bf16.msrb.mxu2 %v4177_v36  ;;  %v3717_v36 = vor.u32 %v4887_v52, %v3714_v28  ;;  %v4991_v52 = vld [vmem:[#allocation8 + $0x5cc] sm:$0xf]  ;;  %v4130_v28 = vld [vmem:[#allocation8 + $0x5d8] sm:$0xf0] }
 0x142   :  { %2313 = vmatpush.bf16.msrb.mxu3 %v4305_v40  ;;  %2273 = vmatmul.bf16.vlgmr.msrb.gmra.mxu0 %v5600_v24  ;;  %v4883_v40 = vld [vmem:[#allocation8 + $0x26c] sm:$0xf]  ;;  %v3650_v31 = vld [vmem:[#allocation8 + $0x218] sm:$0xf0] }
 0x143   :  { %2321 = vmatpush.bf16.msra.mxu0 %v3509_v32  ;;  %2335 = vmatpush.bf16.msra.mxu1 %v3637_v35  ;;  %v3573_v32 = vor.u32 %v4851_v22, %v3570_v23  ;;  %v3426_v35 = vld [vmem:[#allocation8 + $0x58] sm:$0xf0]  ;;  %v3701_v49 = vor.u32 %v4883_v40, %v3698_v41  ;;  %v3669_v23 = vor.u32 %v4875_v12, %v3666_v13  ;;  %v4947_v13 = vld [vmem:[#allocation8 + $0x46c] sm:$0xf] }
 0x144   :  { %2287 = vmatmul.bf16.vlgmr.msrb.gmra.mxu1 %v5602_v33  ;;  %v3429_v42 = vor.u32 %v4815_v34, %v3426_v35  ;;  %v3778_v34 = vld [vmem:[#allocation8 + $0x318] sm:$0xf0]  ;;  %v5027_v35 = vld [vmem:[#allocation8 + $0x6ec] sm:$0xf]  ;;  %v4133_v41 = vor.u32 %v4991_v52, %v4130_v28 }
 0x145   :  { %2300 = vmatpush.bf16.msrb.mxu2 %v4161_v54  ;;  %v5630_v54 = vpop.f32.mrf.mxu1  ;;  %v4402_v40 = vld [vmem:[#allocation8 + $0x7f8] sm:$0xf0]  ;;  %v4943_v28 = vld [vmem:[#allocation8 + $0x44c] sm:$0xf] }
 0x146   :  { %2314 = vmatpush.bf16.msrb.mxu3 %v4289_v26  ;;  %v3682_v26 = vld [vmem:[#allocation8 + $0x258] sm:$0xf0] }
 0x147   :  { %2322 = vmatpush.bf16.msra.mxu0 %v3493_v48  ;;  %2336 = vmatpush.bf16.msra.mxu1 %v3621_v53  ;;  %v3410_v48 = vld [vmem:[#allocation8 + $0x38] sm:$0xf0]  ;;  %v3685_v3 = vor.u32 %v4879_v56, %v3682_v26 }
 0x148   :  { %2301 = vmatmul.bf16.vlgmr.msrb.gmra.mxu2 %v5606_v60  ;;  %v3538_v53 = vld [vmem:[#allocation8 + $0x138] sm:$0xf0] }
 0x149   :  { %2349 = vmatpush.bf16.msra.mxu2 %v3765_v57  ;;  %2315 = vmatmul.bf16.vlgmr.msrb.gmra.mxu3 %v5608_v1  ;;  %v3413_v57 = vor.u32 %v4811_v47, %v3410_v48  ;;  %v3541_v62 = vor.u32 %v4843_v51, %v3538_v53  ;;  %v3986_v45 = vld [vmem:[#allocation8 + $0x4b8] sm:$0xf0]  ;;  %v4987_v48 = vld [vmem:[#allocation8 + $0x5ac] sm:$0xf] }
 0x14a   :  { %2363 = vmatpush.bf16.msra.mxu3 %v3893_v61  ;;  %v4807_v61 = vld [vmem:[#allocation8 + $0xc] sm:$0xf]  ;;  %v4386_v59 = vld [vmem:[#allocation8 + $0x7d8] sm:$0xf0] }
 0x14b   :  { %2323 = vmatpush.bf16.msra.mxu0 %v3477_v0  ;;  %2337 = vmatpush.bf16.msra.mxu1 %v3605_v4  ;;  %v4839_v0 = vld [vmem:[#allocation8 + $0x10c] sm:$0xf]  ;;  %v5634_v8 = vpop.f32.mrf.mxu2  ;;  %v3397_v15 = vor.u32 %v4807_v61, %v3394_v63  ;;  %v3970_v63 = vld [vmem:[#allocation8 + $0x498] sm:$0xf0] }
 0x14c   :  { %v4963_v4 = vld [vmem:[#allocation8 + $0x4ec] sm:$0xf]  ;;  %v3525_v19 = vor.u32 %v4839_v0, %v3522_v2  ;;  %v4098_v2 = vld [vmem:[#allocation8 + $0x598] sm:$0xf0] }
 0x14d   :  { %2350 = vmatpush.bf16.msra.mxu2 %v3749_v7  ;;  %v5632_v7 = vpop.f32.mrf.mxu0  ;;  %v4021_v20 = vor.u32 %v4963_v4, %v4018_v5  ;;  %v5638_v37 = vpop.f32.mrf.mxu1  ;;  %v5023_v53 = vld [vmem:[#allocation8 + $0x6cc] sm:$0xf]  ;;  %v4242_v5 = vld [vmem:[#allocation8 + $0x6b8] sm:$0xf0] }
 0x14e   :  { %2364 = vmatpush.bf16.msra.mxu3 %v3877_v10  ;;  %v4146_v10 = vld [vmem:[#allocation8 + $0x5f8] sm:$0xf0]  ;;  %v4983_v0 = vld [vmem:[#allocation8 + $0x58c] sm:$0xf] }
 0x14f   :  { %2324 = vmatpush.bf16.msra.mxu0 %v3461_v14  ;;  %2338 = vmatpush.bf16.msra.mxu1 %v3589_v18  ;;  %v5636_v14 = vpop.f32.mrf.mxu3  ;;  %v3794_v18 = vld [vmem:[#allocation8 + $0x338] sm:$0xf0]  ;;  %v4149_v22 = vor.u32 %v4995_v6, %v4146_v10  ;;  %v5019_v4 = vld [vmem:[#allocation8 + $0x6ac] sm:$0xf]  ;;  %v4101_v12 = vor.u32 %v4983_v0, %v4098_v2 }
 0x150   :  { %v4370_v10 = vld [vmem:[#allocation8 + $0x7b8] sm:$0xf0] }
 0x151   :  { %2351 = vmatpush.bf16.msra.mxu2 %v3733_v21  ;;  %v4959_v21 = vld [vmem:[#allocation8 + $0x4cc] sm:$0xf]  ;;  %v4354_v52 = vld [vmem:[#allocation8 + $0x798] sm:$0xf0] }
 0x152   :  { %2365 = vmatpush.bf16.msra.mxu3 %v3861_v25  ;;  %v4002_v25 = vld [vmem:[#allocation8 + $0x4d8] sm:$0xf0] }
 0x153   :  { %2325 = vmatpush.bf16.msra.mxu0 %v3445_v29  ;;  %2339 = vmatpush.bf16.msra.mxu1 %v3573_v32  ;;  %v3797_v29 = vor.u32 %v4907_v17, %v3794_v18  ;;  %v4903_v32 = vld [vmem:[#allocation8 + $0x30c] sm:$0xf]  ;;  %v4005_v38 = vor.u32 %v4959_v21, %v4002_v25  ;;  %v5644_v26 = vpop.f32.mrf.mxu2  ;;  %v4245_v18 = vor.u32 %v5019_v4, %v4242_v5  ;;  %v3906_v2 = vld [vmem:[#allocation8 + $0x418] sm:$0xf0] }
 0x154   :  { %v5047_v25 = vld [vmem:[#allocation8 + $0x78c] sm:$0xf]  ;;  %v4034_v4 = vld [vmem:[#allocation8 + $0x518] sm:$0xf0] }
 0x155   :  { %2352 = vmatpush.bf16.msra.mxu2 %v3717_v36  ;;  %v4274_v36 = vld [vmem:[#allocation8 + $0x6f8] sm:$0xf0]  ;;  %v5642_v56 = vpop.f32.mrf.mxu0  ;;  %v5650_v17 = vpop.f32.mrf.mxu1 }
 0x156   :  { %2366 = vmatpush.bf16.msra.mxu3 %v3845_v39  ;;  %v5059_v39 = vld [vmem:[#allocation8 + $0x7ec] sm:$0xf]  ;;  %v4277_v47 = vor.u32 %v5027_v35, %v4274_v36  ;;  %v4066_v35 = vld [vmem:[#allocation8 + $0x558] sm:$0xf0] }
 0x157   :  { %2326 = vmatpush.bf16.msra.mxu0 %v3429_v42  ;;  %2340 = vmatpush.bf16.msra.mxu1 %v3557_v46  ;;  %v3653_v42 = vor.u32 %v4871_v30, %v3650_v31  ;;  %v3781_v46 = vor.u32 %v4903_v32, %v3778_v34  ;;  %v4405_v51 = vor.u32 %v5059_v39, %v4402_v40  ;;  %v5646_v61 = vpop.f32.mrf.mxu3  ;;  %v4975_v34 = vld [vmem:[#allocation8 + $0x54c] sm:$0xf]  ;;  %v4210_v40 = vld [vmem:[#allocation8 + $0x678] sm:$0xf0] }
 0x158   :  { %v5011_v39 = vld [vmem:[#allocation8 + $0x66c] sm:$0xf] }
 0x159   :  { %2353 = vmatpush.bf16.msra.mxu2 %v3701_v49  ;;  %v4114_v49 = vld [vmem:[#allocation8 + $0x5b8] sm:$0xf0] }
 0x15a   :  { %2367 = vmatpush.bf16.msra.mxu3 %v3829_v55  ;;  %v4258_v55 = vld [vmem:[#allocation8 + $0x6d8] sm:$0xf0] }
 0x15b   :  { %2327 = vmatpush.bf16.msra.mxu0 %v3413_v57  ;;  %2341 = vmatpush.bf16.msra.mxu1 %v3541_v62  ;;  %v3989_v57 = vor.u32 %v4955_v43, %v3986_v45  ;;  %v4951_v62 = vld [vmem:[#allocation8 + $0x48c] sm:$0xf]  ;;  %v5654_v31 = vpop.f32.mrf.mxu2  ;;  %v4338_v43 = vld [vmem:[#allocation8 + $0x778] sm:$0xf0]  ;;  %v4069_v45 = vor.u32 %v4975_v34, %v4066_v35  ;;  %v4456_v34 = vld [vmem:[#allocation11 + $0x60] sm:$0xf] }
 0x15c   :  { %v3973_v6 = vor.u32 %v4951_v62, %v3970_v63  ;;  %v5039_v62 = vld [vmem:[#allocation8 + $0x74c] sm:$0xf]  ;;  %v4322_v63 = vld [vmem:[#allocation8 + $0x758] sm:$0xf0] }
 0x15d   :  { %2354 = vmatpush.bf16.msra.mxu2 %v3685_v3  ;;  %v4389_v3 = vor.u32 %v5055_v58, %v4386_v59  ;;  %v5652_v30 = vpop.f32.mrf.mxu0  ;;  %v4194_v58 = vld [vmem:[#allocation8 + $0x658] sm:$0xf0]  ;;  %v5660_v59 = vpop.f32.mrf.mxu1  ;;  %v5075_v35 = vld [vmem:[#allocation11 + $0x64] sm:$0xf0] }
 0x15e   :  { %2368 = vmatpush.bf16.msra.mxu3 %v3813_v9  ;;  %v5051_v9 = vld [vmem:[#allocation8 + $0x7ac] sm:$0xf] }
 0x15f   :  { %2328 = vmatpush.bf16.msra.mxu0 %v3397_v15  ;;  %2342 = vmatpush.bf16.msra.mxu1 %v3525_v19  ;;  %v3954_v15 = vld [vmem:[#allocation8 + $0x478] sm:$0xf0]  ;;  %v4979_v19 = vld [vmem:[#allocation8 + $0x56c] sm:$0xf]  ;;  %v4373_v21 = vor.u32 %v5051_v9, %v4370_v10  ;;  %v5656_v36 = vpop.f32.mrf.mxu3  ;;  %v4528_v10 = vld [vmem:[#allocation11 + $0xf0] sm:$0xf] }
 0x160   :  { %v5077_v9 = vld [vmem:[#allocation11 + $0x74] sm:$0xf0] }
 0x161   :  { %2355 = vmatpush.bf16.msra.mxu2 %v3669_v23  ;;  %v3957_v23 = vor.u32 %v4947_v13, %v3954_v15  ;;  %v5093_v13 = vld [vmem:[#allocation11 + $0xf4] sm:$0xf0]  ;;  %v5003_v15 = vld [vmem:[#allocation8 + $0x62c] sm:$0xf] }
 0x162   :  { %2369 = vmatpush.bf16.msra.mxu3 %v3797_v29  ;;  %2329 = vmatmul.bf16.vlgmr.msra.gmra.mxu0 %v5584_v11  ;;  %v4117_v11 = vor.u32 %v4987_v48, %v4114_v49  ;;  %v3938_v29 = vld [vmem:[#allocation8 + $0x458] sm:$0xf0]  ;;  %v4213_v48 = vor.u32 %v5011_v39, %v4210_v40  ;;  %v4971_v49 = vld [vmem:[#allocation8 + $0x52c] sm:$0xf] }
 0x163   :  { %2377 = vmatpush.bf16.msrb.mxu0 %v4021_v20  ;;  %2391 = vmatpush.bf16.msrb.mxu1 %v4149_v22  ;;  %v4082_v20 = vld [vmem:[#allocation8 + $0x578] sm:$0xf0]  ;;  %v5015_v22 = vld [vmem:[#allocation8 + $0x68c] sm:$0xf] }
 0x164   :  { %2343 = vmatmul.bf16.vlgmr.msra.gmra.mxu1 %v5586_v16  ;;  %v4261_v16 = vor.u32 %v5023_v53, %v4258_v55  ;;  %v5658_v53 = vld [vmem:[#allocation10] sm:$0xf]  ;;  %v5091_v40 = vld [vmem:[#allocation11 + $0xe4] sm:$0xf0] }
 0x165   :  { %2356 = vmatpush.bf16.msra.mxu2 %v3653_v42  ;;  %v5043_v42 = vld [vmem:[#allocation8 + $0x76c] sm:$0xf] }
 0x166   :  { %2370 = vmatpush.bf16.msra.mxu3 %v3781_v46  ;;  %v4939_v46 = vld [vmem:[#allocation8 + $0x42c] sm:$0xf]  ;;  %v4341_v55 = vor.u32 %v5043_v42, %v4338_v43  ;;  %v4162_v42 = vld [vmem:[#allocation8 + $0x618] sm:$0xf0] }
 0x167   :  { %2378 = vmatpush.bf16.msrb.mxu0 %v4005_v38  ;;  %2392 = vmatpush.bf16.msrb.mxu1 %v4133_v41  ;;  %v4357_v38 = vor.u32 %v5047_v25, %v4354_v52  ;;  %v3941_v41 = vor.u32 %v4943_v28, %v3938_v29  ;;  %v5667_v25 = vpop.f32.mrf.mxu3  ;;  %v4529_v29 = vor.u32 %v5093_v13, %v4528_v10  ;;  %v5069_v13 = vld [vmem:[#allocation11 + $0x34] sm:$0xf0] }
 0x168   :  { %2357 = vmatmul.bf16.vlgmr.msra.gmra.mxu2 %v5592_v44  ;;  %v4226_v44 = vld [vmem:[#allocation8 + $0x698] sm:$0xf0] }
 0x169   :  { %2405 = vmatpush.bf16.msrb.mxu2 %v4277_v47  ;;  %2371 = vmatmul.bf16.vlgmr.msra.gmra.mxu3 %v5594_v50  ;;  %v4085_v50 = vor.u32 %v4979_v19, %v4082_v20  ;;  %v4229_v32 = vor.u32 %v5015_v22, %v4226_v44  ;;  %v3922_v47 = vld [vmem:[#allocation8 + $0x438] sm:$0xf0]  ;;  %v697_v19 = vperm.slane %v5658_v53, 0  ;;  %v5663_v20 = vpop.f32.mrf.mxu0  ;;  %v5035_v44 = vld [vmem:[#allocation8 + $0x72c] sm:$0xf] }
 0x16a   :  { %2419 = vmatpush.bf16.msrb.mxu3 %v4405_v51  ;;  %v4050_v51 = vld [vmem:[#allocation8 + $0x538] sm:$0xf0] }
 0x16b   :  { %2379 = vmatpush.bf16.msrb.mxu0 %v3989_v57  ;;  %2393 = vmatpush.bf16.msrb.mxu1 %v4117_v11  ;;  %v5007_v57 = vld [vmem:[#allocation8 + $0x64c] sm:$0xf]  ;;  %v3925_v11 = vor.u32 %v4939_v46, %v3922_v47  ;;  %v4053_v0 = vor.u32 %v4971_v49, %v4050_v51  ;;  %v1997_v28 = vadd.f32 %v5632_v7, %v697_v19  ;;  %v4290_v46 = vld [vmem:[#allocation8 + $0x718] sm:$0xf0] }
 0x16c   :  { %v4197_v5 = vor.u32 %v5007_v57, %v4194_v58  ;;  %v1995_v43 = vadd.f32 %v5628_v27, %v697_v19  ;;  %v4457_v47 = vor.u32 %v5075_v35, %v4456_v34  ;;  %v5073_v57 = vld [vmem:[#allocation11 + $0x54] sm:$0xf0]  ;;  %v4512_v27 = vld [vmem:[#allocation11 + $0xd0] sm:$0xf] }
 0x16d   :  { %2406 = vmatpush.bf16.msrb.mxu2 %v4261_v16  ;;  %v4935_v16 = vld [vmem:[#allocation8 + $0x40c] sm:$0xf]  ;;  %v2011_v7 = vadd.f32 %v5638_v37, %v1997_v28  ;;  %v5085_v19 = vld [vmem:[#allocation11 + $0xb4] sm:$0xf0] }
 0x16e   :  { %2420 = vmatpush.bf16.msrb.mxu3 %v4389_v3  ;;  %v4967_v3 = vld [vmem:[#allocation8 + $0x50c] sm:$0xf]  ;;  %v3909_v22 = vor.u32 %v4935_v16, %v3906_v2 }
 0x16f   :  { %2380 = vmatpush.bf16.msrb.mxu0 %v3973_v6  ;;  %2394 = vmatpush.bf16.msrb.mxu1 %v4101_v12  ;;  %v4464_v6 = vld [vmem:[#allocation11 + $0x70] sm:$0xf]  ;;  %v4325_v12 = vor.u32 %v5039_v62, %v4322_v63  ;;  %v4037_v52 = vor.u32 %v4967_v3, %v4034_v4  ;;  %v2009_v62 = vadd.f32 %v5630_v54, %v1995_v43  ;;  %v4440_v4 = vld [vmem:[#allocation11 + $0x40] sm:$0xf] }
 0x170   :  { %v2025_v63 = vadd.f32 %v5644_v26, %v2011_v7  ;;  %v4504_v54 = vld [vmem:[#allocation11 + $0xc0] sm:$0xf] }
 0x171   :  { %2407 = vmatpush.bf16.msrb.mxu2 %v4245_v18  ;;  %v4178_v18 = vld [vmem:[#allocation8 + $0x638] sm:$0xf0]  ;;  %v2023_v16 = vadd.f32 %v5634_v8, %v2009_v62 }
 0x172   :  { %2421 = vmatpush.bf16.msrb.mxu3 %v4373_v21  ;;  %v5665_v21 = vpop.f32.mrf.mxu2  ;;  %v2039_v26 = vadd.f32 %v5646_v61, %v2025_v63  ;;  %v5079_v63 = vld [vmem:[#allocation11 + $0x84] sm:$0xf0] }
 0x173   :  { %2381 = vmatpush.bf16.msrb.mxu0 %v3957_v23  ;;  %2395 = vmatpush.bf16.msrb.mxu1 %v4085_v50  ;;  %v4306_v23 = vld [vmem:[#allocation8 + $0x738] sm:$0xf0]  ;;  %v4465_v50 = vor.u32 %v5077_v9, %v4464_v6  ;;  %v2148_v6 = vpop.f32.mrf.mxu3  ;;  %v5087_v9 = vld [vmem:[#allocation11 + $0xc4] sm:$0xf0]  ;;  %v2037_v8 = vadd.f32 %v5636_v14, %v2023_v16  ;;  %v4466_v16 = vld [vmem:[#allocation11 + $0x78] sm:$0xf0] }
 0x174   :  { %v4309_v39 = vor.u32 %v5035_v44, %v4306_v23  ;;  %v4505_v10 = vor.u32 %v5087_v9, %v4504_v54  ;;  %v5107_v54 = vld [vmem:[#allocation11 + $0x164] sm:$0xf0] }
 0x175   :  { %2408 = vmatpush.bf16.msrb.mxu2 %v4229_v32  ;;  %v4181_v32 = vor.u32 %v5003_v15, %v4178_v18  ;;  %v4496_v18 = vld [vmem:[#allocation11 + $0xb0] sm:$0xf] }
 0x176   :  { %2422 = vmatpush.bf16.msrb.mxu3 %v4357_v38  ;;  %v4520_v38 = vld [vmem:[#allocation11 + $0xe0] sm:$0xf]  ;;  %v4497_v14 = vor.u32 %v5085_v19, %v4496_v18  ;;  %v5090_v19 = vld [vmem:[#allocation11 + $0xe4] sm:$0xf] }
 0x177   :  { %2382 = vmatpush.bf16.msrb.mxu0 %v3941_v41  ;;  %2396 = vmatpush.bf16.msrb.mxu1 %v4069_v45  ;;  %v4999_v41 = vld [vmem:[#allocation8 + $0x60c] sm:$0xf]  ;;  %v4521_v49 = vor.u32 %v5091_v40, %v4520_v38 }
 0x178   :  { %v5031_v45 = vld [vmem:[#allocation8 + $0x70c] sm:$0xf]  ;;  %v4165_v51 = vor.u32 %v4999_v41, %v4162_v42  ;;  %v4416_v41 = vld [vmem:[#allocation11 + $0x10] sm:$0xf]  ;;  %v5065_v42 = vld [vmem:[#allocation11 + $0x14] sm:$0xf0] }
 0x179   :  { %2409 = vmatpush.bf16.msrb.mxu2 %v4213_v48  ;;  %v2120_v48 = vpop.f32.mrf.mxu1  ;;  %v4293_v58 = vor.u32 %v5031_v45, %v4290_v46  ;;  %v4480_v45 = vld [vmem:[#allocation11 + $0x90] sm:$0xf]  ;;  %v5081_v46 = vld [vmem:[#allocation11 + $0x94] sm:$0xf0] }
 0x17a   :  { %2423 = vmatpush.bf16.msrb.mxu3 %v4341_v55  ;;  %v4448_v55 = vld [vmem:[#allocation11 + $0x50] sm:$0xf]  ;;  %v2134_v2 = vpop.f32.mrf.mxu2 }
 0x17b   :  { %2383 = vmatpush.bf16.msrb.mxu0 %v3925_v11  ;;  %2397 = vmatpush.bf16.msrb.mxu1 %v4053_v0  ;;  %v5089_v11 = vld [vmem:[#allocation11 + $0xd4] sm:$0xf0]  ;;  %v4449_v37 = vor.u32 %v5073_v57, %v4448_v55  ;;  %v2108_v0 = vpop.f32.mrf.mxu0  ;;  %v2150_v38 = vpop.f32.mrf.mxu3  ;;  %v4408_v57 = vld [vmem:[#allocation11] sm:$0xf] }
 0x17c   :  { %v4513_v3 = vor.u32 %v5089_v11, %v4512_v27  ;;  %v5109_v55 = vld [vmem:[#allocation11 + $0x174] sm:$0xf0]  ;;  %v4472_v27 = vld [vmem:[#allocation11 + $0x80] sm:$0xf] }
 0x17d   :  { %2410 = vmatpush.bf16.msrb.mxu2 %v4197_v5  ;;  %v698_v5 = vperm.slane %v5658_v53, 1 }
 0x17e   :  { %2424 = vmatpush.bf16.msrb.mxu3 %v4325_v12  ;;  %v4432_v12 = vld [vmem:[#allocation11 + $0x30] sm:$0xf] }
 0x17f   :  { %2384 = vmatpush.bf16.msrb.mxu0 %v3909_v22  ;;  %2398 = vmatpush.bf16.msrb.mxu1 %v4037_v52  ;;  %v2107_v15 = vadd.f32 %v5663_v20, %v698_v5  ;;  %v2053_v22 = vadd.f32 %v5652_v30, %v2039_v26  ;;  %v4433_v61 = vor.u32 %v5069_v13, %v4432_v12  ;;  %v4424_v52 = vld [vmem:[#allocation11 + $0x20] sm:$0xf] }
 0x180   :  { %v2109_v28 = vadd.f32 %v2108_v0, %v698_v5  ;;  %v4473_v26 = vor.u32 %v5079_v63, %v4472_v27  ;;  %v5068_v27 = vld [vmem:[#allocation11 + $0x34] sm:$0xf]  ;;  %v4498_v63 = vld [vmem:[#allocation11 + $0xb8] sm:$0xf0] }
 0x181   :  { %2411 = vmatpush.bf16.msrb.mxu2 %v4181_v32  ;;  %v2122_v44 = vpop.f32.mrf.mxu1  ;;  %v5083_v32 = vld [vmem:[#allocation11 + $0xa4] sm:$0xf0]  ;;  %v2067_v20 = vadd.f32 %v5660_v59, %v2053_v22  ;;  %v4522_v22 = vld [vmem:[#allocation11 + $0xe8] sm:$0xf0] }
 0x182   :  { %2425 = vmatpush.bf16.msrb.mxu3 %v4309_v39  ;;  %2385 = vmatmul.bf16.vlgmr.msrb.gmra.mxu0 %v5600_v24  ;;  %v5071_v24 = vld [vmem:[#allocation11 + $0x44] sm:$0xf0]  ;;  %v2136_v34 = vpop.f32.mrf.mxu2  ;;  %v2123_v43 = vadd.f32 %v2122_v44, %v2109_v28  ;;  %v4525_v28 = vor.u32 %v5090_v19, %v4522_v22  ;;  %v5108_v19 = vld [vmem:[#allocation11 + $0x174] sm:$0xf]  ;;  %v4594_v22 = vld [vmem:[#allocation11 + $0x178] sm:$0xf0] }
 0x183   :  { %2835 = vmatpush.bf16.msra.mxu0 %v4465_v50  ;;  %2849 = vmatpush.bf16.msra.mxu1 %v4529_v29  ;;  %v2162_v23 = vpop.f32.mrf.mxu0  ;;  %v2121_v50 = vadd.f32 %v2120_v48, %v2107_v15  ;;  %v4488_v29 = vld [vmem:[#allocation11 + $0xa0] sm:$0xf]  ;;  %v4458_v15 = vld [vmem:[#allocation11 + $0x68] sm:$0xf0] }
 0x184   :  { %2399 = vmatmul.bf16.vlgmr.msrb.gmra.mxu1 %v5602_v33  ;;  %v4441_v33 = vor.u32 %v5071_v24, %v4440_v4  ;;  %v4489_v40 = vor.u32 %v5083_v32, %v4488_v29  ;;  %v2137_v48 = vadd.f32 %v2136_v34, %v2123_v43  ;;  %v4530_v4 = vld [vmem:[#allocation11 + $0xf8] sm:$0xf0]  ;;  %v5072_v29 = vld [vmem:[#allocation11 + $0x54] sm:$0xf] }
 0x185   :  { %2412 = vmatpush.bf16.msrb.mxu2 %v4165_v51  ;;  %v2135_v35 = vadd.f32 %v2134_v2, %v2121_v50  ;;  %v4592_v51 = vld [vmem:[#allocation11 + $0x170] sm:$0xf]  ;;  %v4450_v32 = vld [vmem:[#allocation11 + $0x58] sm:$0xf0] }
 0x186   :  { %2426 = vmatpush.bf16.msrb.mxu3 %v4293_v58  ;;  %v5063_v58 = vld [vmem:[#allocation11 + $0x4] sm:$0xf0]  ;;  %v4593_v11 = vor.u32 %v5109_v55, %v4592_v51  ;;  %v2151_v24 = vadd.f32 %v2150_v38, %v2137_v48  ;;  %v4568_v38 = vld [vmem:[#allocation11 + $0x140] sm:$0xf]  ;;  %v4560_v51 = vld [vmem:[#allocation11 + $0x130] sm:$0xf] }
 0x187   :  { %2836 = vmatpush.bf16.msra.mxu0 %v4457_v47  ;;  %2850 = vmatpush.bf16.msra.mxu1 %v4521_v49  ;;  %v2149_v59 = vadd.f32 %v2148_v6, %v2135_v35  ;;  %v4417_v49 = vor.u32 %v5065_v42, %v4416_v41  ;;  %v4584_v6 = vld [vmem:[#allocation11 + $0x160] sm:$0xf]  ;;  %v4514_v35 = vld [vmem:[#allocation11 + $0xd8] sm:$0xf0]  ;;  %v4453_v42 = vor.u32 %v5072_v29, %v4450_v32  ;;  %v5101_v55 = vld [vmem:[#allocation11 + $0x134] sm:$0xf0] }
 0x188   :  { %2413 = vmatmul.bf16.vlgmr.msrb.gmra.mxu2 %v5606_v60  ;;  %v2051_v60 = vadd.f32 %v5642_v56, %v2037_v8  ;;  %v2081_v56 = vadd.f32 %v5665_v21, %v2067_v20  ;;  %v4481_v21 = vor.u32 %v5081_v46, %v4480_v45  ;;  %v4585_v8 = vor.u32 %v5107_v54, %v4584_v6  ;;  %v5088_v20 = vld [vmem:[#allocation11 + $0xd4] sm:$0xf]  ;;  %v5070_v46 = vld [vmem:[#allocation11 + $0x44] sm:$0xf]  ;;  %v5097_v6 = vld [vmem:[#allocation11 + $0x114] sm:$0xf0] }
 0x189   :  { %2427 = vmatmul.bf16.vlgmr.msrb.gmra.mxu3 %v5608_v1  ;;  %v5067_v1 = vld [vmem:[#allocation11 + $0x24] sm:$0xf0]  ;;  %v2176_v7 = vpop.f32.mrf.mxu1  ;;  %v2163_v62 = vadd.f32 %v2162_v23, %v2149_v59  ;;  %2863 = vmatpush.bf16.msra.mxu2 %v4593_v11  ;;  %v4517_v45 = vor.u32 %v5088_v20, %v4514_v35  ;;  %v4506_v59 = vld [vmem:[#allocation11 + $0xc8] sm:$0xf0]  ;;  %v4434_v11 = vld [vmem:[#allocation11 + $0x38] sm:$0xf0] }
 0x18a   :  { %v4425_v30 = vor.u32 %v5067_v1, %v4424_v52  ;;  %v2065_v39 = vadd.f32 %v5650_v17, %v2051_v60  ;;  %v2095_v17 = vadd.f32 %v5667_v25, %v2081_v56  ;;  %v4409_v25 = vor.u32 %v5063_v58, %v4408_v57  ;;  %v5105_v60 = vld [vmem:[#allocation11 + $0x154] sm:$0xf0]  ;;  %v5106_v29 = vld [vmem:[#allocation11 + $0x164] sm:$0xf]  ;;  %v4586_v32 = vld [vmem:[#allocation11 + $0x168] sm:$0xf0] }
 0x18b   :  { %2837 = vmatpush.bf16.msra.mxu0 %v4449_v37  ;;  %2851 = vmatpush.bf16.msra.mxu1 %v4513_v3  ;;  %v5076_v37 = vld [vmem:[#allocation11 + $0x74] sm:$0xf]  ;;  %v2164_v0 = vpop.f32.mrf.mxu0  ;;  %v2190_v2 = vpop.f32.mrf.mxu2 }
 0x18c   :  { %v2079_v47 = vadd.f32 %v5654_v31, %v2065_v39  ;;  %v5092_v3 = vld [vmem:[#allocation11 + $0xf4] sm:$0xf]  ;;  %v2204_v5 = vpop.f32.mrf.mxu3  ;;  %v2437_v9 = vmax.f32 %v2095_v17, 0.0  ;;  %v2165_v12 = vadd.f32 %v2164_v0, %v2151_v24  ;;  %v5082_v24 = vld [vmem:[#allocation11 + $0xa4] sm:$0xf] }
 0x18d   :  { %v4533_v13 = vor.u32 %v5092_v3, %v4530_v4  ;;  %2864 = vmatpush.bf16.msra.mxu2 %v4585_v8  ;;  %v5066_v3 = vld [vmem:[#allocation11 + $0x24] sm:$0xf]  ;;  %v4426_v4 = vld [vmem:[#allocation11 + $0x28] sm:$0xf0]  ;;  %v4418_v8 = vld [vmem:[#allocation11 + $0x18] sm:$0xf0] }
 0x18e   :  { %v2093_v31 = vadd.f32 %v5656_v36, %v2079_v47  ;;  %v5074_v36 = vld [vmem:[#allocation11 + $0x64] sm:$0xf]  ;;  %v4442_v47 = vld [vmem:[#allocation11 + $0x48] sm:$0xf0]  ;;  %v4429_v54 = vor.u32 %v5066_v3, %v4426_v4  ;;  %v5104_v35 = vld [vmem:[#allocation11 + $0x154] sm:$0xf] }
 0x18f   :  { %2838 = vmatpush.bf16.msra.mxu0 %v4441_v33  ;;  %2852 = vmatpush.bf16.msra.mxu1 %v4505_v10  ;;  %v4469_v33 = vor.u32 %v5076_v37, %v4466_v16  ;;  %v2177_v10 = vadd.f32 %v2176_v7, %v2163_v62  ;;  %v4461_v52 = vor.u32 %v5074_v36, %v4458_v15  ;;  %v5086_v7 = vld [vmem:[#allocation11 + $0xc4] sm:$0xf]  ;;  %v5084_v62 = vld [vmem:[#allocation11 + $0xb4] sm:$0xf]  ;;  %v4552_v37 = vld [vmem:[#allocation11 + $0x120] sm:$0xf] }
 0x190   :  { %v2433_v18 = vmax.f32 %v2093_v31, 0.0  ;;  %v4445_v17 = vor.u32 %v5070_v46, %v4442_v47  ;;  %v4509_v58 = vor.u32 %v5086_v7, %v4506_v59  ;;  %v5099_v16 = vld [vmem:[#allocation11 + $0x124] sm:$0xf0]  ;;  %v4437_v31 = vor.u32 %v5068_v27, %v4434_v11  ;;  %v5100_v47 = vld [vmem:[#allocation11 + $0x134] sm:$0xf] }
 0x191   :  { %v2191_v44 = vadd.f32 %v2190_v2, %v2177_v10  ;;  %v4553_v0 = vor.u32 %v5099_v16, %v4552_v37  ;;  %v4501_v2 = vor.u32 %v5084_v62, %v4498_v63  ;;  %v5080_v10 = vld [vmem:[#allocation11 + $0x94] sm:$0xf]  ;;  %v5095_v36 = vld [vmem:[#allocation11 + $0x104] sm:$0xf0]  ;;  %v4562_v7 = vld [vmem:[#allocation11 + $0x138] sm:$0xf0] }
 0x192   :  { %v5691_v23 = vpack.c.bf16 %v2437_v9, %v2433_v18  ;;  %v4565_v59 = vor.u32 %v5100_v47, %v4562_v7  ;;  %v5096_v27 = vld [vmem:[#allocation11 + $0x114] sm:$0xf]  ;;  %v4546_v11 = vld [vmem:[#allocation11 + $0x118] sm:$0xf0]  ;;  %v4600_v47 = vld [vmem:[#allocation11 + $0x180] sm:$0xf] }
 0x193   :  { %2839 = vmatpush.bf16.msra.mxu0 %v4433_v61  ;;  %2853 = vmatpush.bf16.msra.mxu1 %v4497_v14  ;;  %v4576_v61 = vld [vmem:[#allocation11 + $0x150] sm:$0xf]  ;;  %v2178_v14 = vpop.f32.mrf.mxu1  ;;  %v2192_v34 = vpop.f32.mrf.mxu2  ;;  %v2205_v39 = vadd.f32 %v2204_v5, %v2191_v44  ;;  %v4490_v5 = vld [vmem:[#allocation11 + $0xa8] sm:$0xf0]  ;;  %v4549_v37 = vor.u32 %v5096_v27, %v4546_v11  ;;  %v5111_v7 = vld [vmem:[#allocation11 + $0x184] sm:$0xf0] }
 0x194   :  { %v4577_v1 = vor.u32 %v5105_v60, %v4576_v61  ;;  %v2179_v50 = vadd.f32 %v2178_v14, %v2165_v12  ;;  %v2206_v41 = vpop.f32.mrf.mxu3  ;;  %v4482_v12 = vld [vmem:[#allocation11 + $0x98] sm:$0xf0]  ;;  %v5062_v61 = vld [vmem:[#allocation11 + $0x4] sm:$0xf]  ;;  %v4410_v60 = vld [vmem:[#allocation11 + $0x8] sm:$0xf0]  ;;  %v4597_v14 = vor.u32 %v5108_v19, %v4594_v22 }
 0x195   :  { %v2434_v48 = vmax.f32 %v2205_v39, 0.0  ;;  %v4485_v44 = vor.u32 %v5080_v10, %v4482_v12  ;;  %v4648_v10 = vld [vmem:[#allocation11 + $0x1e0] sm:$0xf]  ;;  %v5123_v12 = vld [vmem:[#allocation11 + $0x1e4] sm:$0xf0] }
 0x196   :  { %2865 = vmatpush.bf16.msra.mxu2 %v4577_v1  ;;  %v2193_v56 = vadd.f32 %v2192_v34, %v2179_v50  ;;  %v4474_v1 = vld [vmem:[#allocation11 + $0x88] sm:$0xf0]  ;;  %v4589_v34 = vor.u32 %v5106_v29, %v4586_v32  ;;  %v4640_v19 = vld [vmem:[#allocation11 + $0x1d0] sm:$0xf]  ;;  %v5121_v22 = vld [vmem:[#allocation11 + $0x1d4] sm:$0xf0] }
 0x197   :  { %2840 = vmatpush.bf16.msra.mxu0 %v4425_v30  ;;  %2854 = vmatpush.bf16.msra.mxu1 %v4489_v40  ;;  %v5103_v30 = vld [vmem:[#allocation11 + $0x144] sm:$0xf0] }
 0x198   :  { %v4569_v40 = vor.u32 %v5103_v30, %v4568_v38  ;;  %v2207_v43 = vadd.f32 %v2206_v41, %v2193_v56  ;;  %v4578_v38 = vld [vmem:[#allocation11 + $0x158] sm:$0xf0]  ;;  %v5102_v56 = vld [vmem:[#allocation11 + $0x144] sm:$0xf] }
 0x199   :  { %v4581_v30 = vor.u32 %v5104_v35, %v4578_v38  ;;  %v4624_v38 = vld [vmem:[#allocation11 + $0x1b0] sm:$0xf] }
 0x19a   :  { %2866 = vmatpush.bf16.msra.mxu2 %v4569_v40  ;;  %v4570_v40 = vld [vmem:[#allocation11 + $0x148] sm:$0xf0] }
 0x19b   :  { %2841 = vmatpush.bf16.msra.mxu0 %v4417_v49  ;;  %2855 = vmatpush.bf16.msra.mxu1 %v4481_v21  ;;  %v2438_v49 = vmax.f32 %v2207_v43, 0.0  ;;  %v4561_v21 = vor.u32 %v5101_v55, %v4560_v51  ;;  %v4573_v41 = vor.u32 %v5102_v56, %v4570_v40  ;;  %v5098_v51 = vld [vmem:[#allocation11 + $0x124] sm:$0xf]  ;;  %v4616_v40 = vld [vmem:[#allocation11 + $0x1a0] sm:$0xf] }
 0x19d   :  { %v5694_v57 = vpack.c.bf16 %v2438_v49, %v2434_v48 }
 0x19e   :  { %2867 = vmatpush.bf16.msra.mxu2 %v4561_v21 }
 0x19f   :  { %2842 = vmatpush.bf16.msra.mxu0 %v4409_v25  ;;  %2856 = vmatpush.bf16.msra.mxu1 %v4473_v26  ;;  %v4544_v25 = vld [vmem:[#allocation11 + $0x110] sm:$0xf]  ;;  %v4493_v26 = vor.u32 %v5082_v24, %v4490_v5  ;;  %v2218_v50 = vpop.f32.mrf.mxu0 }
 0x1a0   :  { %v4545_v9 = vor.u32 %v5097_v6, %v4544_v25  ;;  %v4656_v5 = vld [vmem:[#allocation11 + $0x1f0] sm:$0xf]  ;;  %v5125_v25 = vld [vmem:[#allocation11 + $0x1f4] sm:$0xf0] }
 0x1a1   :  { %v2232_v39 = vpop.f32.mrf.mxu1  ;;  %v4657_v6 = vor.u32 %v5125_v25, %v4656_v5  ;;  %v5114_v5 = vld [vmem:[#allocation11 + $0x1a4] sm:$0xf]  ;;  %v4618_v25 = vld [vmem:[#allocation11 + $0x1a8] sm:$0xf0] }
 0x1a2   :  { %2843 = vmatmul.bf16.vlgmr.msra.gmra.mxu0 %v5691_v23  ;;  %2857 = vmatmul.bf16.vlgmr.msra.gmra.mxu1 %v5694_v57 }
 0x1a3   :  { %2891 = vmatpush.bf16.msrb.mxu0 %v4469_v33  ;;  %2905 = vmatpush.bf16.msrb.mxu1 %v4533_v13  ;;  %v5064_v33 = vld [vmem:[#allocation11 + $0x14] sm:$0xf]  ;;  %v4536_v13 = vld [vmem:[#allocation11 + $0x100] sm:$0xf] }
 0x1a4   :  { %2868 = vmatpush.bf16.msra.mxu2 %v4553_v0  ;;  %v4421_v15 = vor.u32 %v5064_v33, %v4418_v8  ;;  %v4537_v18 = vor.u32 %v5095_v36, %v4536_v13  ;;  %v5094_v0 = vld [vmem:[#allocation11 + $0x104] sm:$0xf]  ;;  %2877 = vmatpush.bf16.msra.mxu3 %v4657_v6  ;;  %v4649_v13 = vor.u32 %v5123_v12, %v4648_v10  ;;  %v5112_v12 = vld [vmem:[#allocation11 + $0x194] sm:$0xf] }
 0x1a7   :  { %2892 = vmatpush.bf16.msrb.mxu0 %v4461_v52  ;;  %2906 = vmatpush.bf16.msrb.mxu1 %v4525_v28  ;;  %v5078_v52 = vld [vmem:[#allocation11 + $0x84] sm:$0xf]  ;;  %v4413_v28 = vor.u32 %v5062_v61, %v4410_v60  ;;  %v4641_v61 = vor.u32 %v5121_v22, %v4640_v19  ;;  %v4602_v22 = vld [vmem:[#allocation11 + $0x188] sm:$0xf0] }
 0x1a8   :  { %2869 = vmatpush.bf16.msra.mxu2 %v4545_v9  ;;  %v4477_v20 = vor.u32 %v5078_v52, %v4474_v1  ;;  %2878 = vmatpush.bf16.msra.mxu3 %v4649_v13  ;;  %v4632_v52 = vld [vmem:[#allocation11 + $0x1c0] sm:$0xf]  ;;  %v5119_v1 = vld [vmem:[#allocation11 + $0x1c4] sm:$0xf0]  ;;  %v4610_v13 = vld [vmem:[#allocation11 + $0x198] sm:$0xf0] }
 0x1a9   :  { %v2234_v49 = vpop.f32.mrf.mxu1  ;;  %v4633_v29 = vor.u32 %v5119_v1, %v4632_v52  ;;  %v5110_v19 = vld [vmem:[#allocation11 + $0x184] sm:$0xf] }
 0x1ab   :  { %2893 = vmatpush.bf16.msrb.mxu0 %v4453_v42  ;;  %2907 = vmatpush.bf16.msrb.mxu1 %v4517_v45  ;;  %v2220_v42 = vpop.f32.mrf.mxu0  ;;  %v2246_v43 = vpop.f32.mrf.mxu2  ;;  %v699_v45 = vperm.slane %v5658_v53, 2 }
 0x1ac   :  { %2870 = vmatpush.bf16.msra.mxu2 %v4537_v18  ;;  %v2260_v46 = vpop.f32.mrf.mxu3  ;;  %2879 = vmatpush.bf16.msra.mxu3 %v4641_v61  ;;  %v4605_v61 = vor.u32 %v5110_v19, %v4602_v22 }
 0x1ad   :  { %v2219_v48 = vadd.f32 %v2218_v50, %v699_v45 }
 0x1af   :  { %2894 = vmatpush.bf16.msrb.mxu0 %v4445_v17  ;;  %2908 = vmatpush.bf16.msrb.mxu1 %v4509_v58  ;;  %v2233_v21 = vadd.f32 %v2232_v39, %v2219_v48  ;;  %v5124_v48 = vld [vmem:[#allocation11 + $0x1f4] sm:$0xf] }
 0x1b0   :  { %2919 = vmatpush.bf16.msrb.mxu2 %v4597_v14  ;;  %2880 = vmatpush.bf16.msra.mxu3 %v4633_v29 }
 0x1b1   :  { %v2247_v62 = vadd.f32 %v2246_v43, %v2233_v21  ;;  %v4608_v43 = vld [vmem:[#allocation11 + $0x190] sm:$0xf] }
 0x1b3   :  { %2895 = vmatpush.bf16.msrb.mxu0 %v4437_v31  ;;  %2909 = vmatpush.bf16.msrb.mxu1 %v4501_v2  ;;  %v2248_v58 = vpop.f32.mrf.mxu2  ;;  %v4538_v2 = vld [vmem:[#allocation11 + $0x108] sm:$0xf0]  ;;  %v2261_v3 = vadd.f32 %v2260_v46, %v2247_v62  ;;  %v5118_v62 = vld [vmem:[#allocation11 + $0x1c4] sm:$0xf] }
 0x1b4   :  { %2920 = vmatpush.bf16.msrb.mxu2 %v4589_v34  ;;  %v2262_v63 = vpop.f32.mrf.mxu3  ;;  %v4541_v24 = vor.u32 %v5094_v0, %v4538_v2  ;;  %v700_v0 = vperm.slane %v5658_v53, 3 }
 0x1b7   :  { %2896 = vmatpush.bf16.msrb.mxu0 %v4429_v54  ;;  %2910 = vmatpush.bf16.msrb.mxu1 %v4493_v26 }
 0x1b8   :  { %2921 = vmatpush.bf16.msrb.mxu2 %v4581_v30  ;;  %v5117_v30 = vld [vmem:[#allocation11 + $0x1b4] sm:$0xf0] }
 0x1b9   :  { %v4625_v39 = vor.u32 %v5117_v30, %v4624_v38 }
 0x1bb   :  { %2897 = vmatpush.bf16.msrb.mxu0 %v4421_v15  ;;  %2911 = vmatpush.bf16.msrb.mxu1 %v4485_v44 }
 0x1bc   :  { %2922 = vmatpush.bf16.msrb.mxu2 %v4573_v41  ;;  %2881 = vmatpush.bf16.msra.mxu3 %v4625_v39  ;;  %v5115_v41 = vld [vmem:[#allocation11 + $0x1a4] sm:$0xf0] }
 0x1bf   :  { %2898 = vmatpush.bf16.msrb.mxu0 %v4413_v28  ;;  %2912 = vmatpush.bf16.msrb.mxu1 %v4477_v20  ;;  %v2274_v17 = vpop.f32.mrf.mxu0 }
 0x1c0   :  { %2923 = vmatpush.bf16.msrb.mxu2 %v4565_v59  ;;  %v2275_v54 = vadd.f32 %v2274_v17, %v2261_v3  ;;  %v4601_v59 = vor.u32 %v5111_v7, %v4600_v47  ;;  %v4650_v17 = vld [vmem:[#allocation11 + $0x1e8] sm:$0xf0]  ;;  %v5116_v3 = vld [vmem:[#allocation11 + $0x1b4] sm:$0xf] }
 0x1c1   :  { %v2288_v31 = vpop.f32.mrf.mxu1  ;;  %v5132_v47 = vld [vmem:[#allocation13 + $0x30] sm:$0xff]  ;;  %v5131_v7 = vld [vmem:[#allocation13 + $0x28] sm:$0xff] }
 0x1c2   :  { %2899 = vmatmul.bf16.vlgmr.msrb.gmra.mxu0 %v5691_v23  ;;  %2913 = vmatmul.bf16.vlgmr.msrb.gmra.mxu1 %v5694_v57  ;;  %v4554_v23 = vld [vmem:[#allocation11 + $0x128] sm:$0xf0]  ;;  %v2221_v57 = vadd.f32 %v2220_v42, %v699_v45  ;;  %v2289_v36 = vadd.f32 %v2288_v31, %v2275_v54  ;;  %v4617_v42 = vor.u32 %v5115_v41, %v4616_v40  ;;  %v5113_v45 = vld [vmem:[#allocation11 + $0x194] sm:$0xf0] }
 0x1c3   :  { %v4557_v55 = vor.u32 %v5098_v51, %v4554_v23  ;;  %v4609_v46 = vor.u32 %v5113_v45, %v4608_v43  ;;  %v4621_v54 = vor.u32 %v5114_v5, %v4618_v25 }
 0x1c4   :  { %v2235_v16 = vadd.f32 %v2234_v49, %v2221_v57  ;;  %2882 = vmatpush.bf16.msra.mxu3 %v4617_v42  ;;  %v4658_v49 = vld [vmem:[#allocation11 + $0x1f8] sm:$0xf0]  ;;  %v5120_v57 = vld [vmem:[#allocation11 + $0x1d4] sm:$0xf] }
 0x1c5   :  { %2924 = vmatpush.bf16.msrb.mxu2 %v4557_v55  ;;  %v4661_v51 = vor.u32 %v5124_v48, %v4658_v49  ;;  %v5122_v55 = vld [vmem:[#allocation11 + $0x1e4] sm:$0xf]  ;;  %v5129_v48 = vld [vmem:[#allocation13 + $0x18] sm:$0xff] }
 0x1c6   :  { %v2249_v4 = vadd.f32 %v2248_v58, %v2235_v16  ;;  %v4653_v21 = vor.u32 %v5122_v55, %v4650_v17  ;;  %v4642_v58 = vld [vmem:[#allocation11 + $0x1d8] sm:$0xf0]  ;;  %v5127_v55 = vld [vmem:[#allocation13 + $0x8] sm:$0xff] }
 0x1c7   :  { %v2276_v9 = vpop.f32.mrf.mxu0  ;;  %v4645_v27 = vor.u32 %v5120_v57, %v4642_v58  ;;  %v5141_v49 = vld [vmem:[#allocation13 + $0x78] sm:$0xff]  ;;  %v5139_v17 = vld [vmem:[#allocation13 + $0x68] sm:$0xff]  ;;  %v5138_v57 = vld [vmem:[#allocation13 + $0x60] sm:$0xff] }
 0x1c8   :  { %v2263_v33 = vadd.f32 %v2262_v63, %v2249_v4  ;;  %2883 = vmatpush.bf16.msra.mxu3 %v4609_v46  ;;  %v4634_v63 = vld [vmem:[#allocation11 + $0x1c8] sm:$0xf0]  ;;  %v4626_v4 = vld [vmem:[#allocation11 + $0x1b8] sm:$0xf0]  ;;  %3099 = vmatpush.bf16.msra.mxu1 %v5141_v49 }
 0x1c9   :  { %2925 = vmatpush.bf16.msrb.mxu2 %v4549_v37  ;;  %v2290_v44 = vpop.f32.mrf.mxu1  ;;  %v4637_v37 = vor.u32 %v5118_v62, %v4634_v63  ;;  %v5133_v46 = vld [vmem:[#allocation13 + $0x38] sm:$0xff]  ;;  %v5135_v63 = vld [vmem:[#allocation13 + $0x48] sm:$0xff] }
 0x1ca   :  { %v2277_v15 = vadd.f32 %v2276_v9, %v2263_v33  ;;  %3085 = vmatpush.bf16.msra.mxu0 %v5133_v46  ;;  %v5137_v58 = vld [vmem:[#allocation13 + $0x58] sm:$0xff]  ;;  %v5142_v46 = vld [vmem:[#allocation14] sm:$0xff] }
 0x1cb   :  { %v2302_v26 = vpop.f32.mrf.mxu2 }
 0x1cc   :  { %v2316_v8 = vpop.f32.mrf.mxu3  ;;  %v2303_v18 = vadd.f32 %v2302_v26, %v2289_v36  ;;  %v2291_v60 = vadd.f32 %v2290_v44, %v2277_v15  ;;  %2884 = vmatpush.bf16.msra.mxu3 %v4601_v59  ;;  %v4613_v15 = vor.u32 %v5112_v12, %v4610_v13  ;;  %v5130_v59 = vld [vmem:[#allocation13 + $0x20] sm:$0xff] }
 0x1cd   :  { %2926 = vmatpush.bf16.msrb.mxu2 %v4541_v24  ;;  %v4629_v24 = vor.u32 %v5116_v3, %v4626_v4 }
 0x1ce   :  { %v2317_v50 = vadd.f32 %v2316_v8, %v2303_v18  ;;  %3086 = vmatpush.bf16.msra.mxu0 %v5132_v47  ;;  %v5157_v47 = vld [vmem:[#allocation16 + $0x38] sm:$0xff] }
 0x1d0   :  { %v2435_v34 = vmax.f32 %v2317_v50, 0.0  ;;  %2933 = vmatpush.bf16.msrb.mxu3 %v4661_v51  ;;  %v5128_v51 = vld [vmem:[#allocation13 + $0x10] sm:$0xff] }
 0x1d2   :  { %3087 = vmatpush.bf16.msra.mxu0 %v5131_v7  ;;  %v5156_v7 = vld [vmem:[#allocation16 + $0x30] sm:$0xff] }
 0x1d3   :  { %v2304_v14 = vpop.f32.mrf.mxu2 }
 0x1d4   :  { %v2305_v28 = vadd.f32 %v2304_v14, %v2291_v60  ;;  %v2318_v32 = vpop.f32.mrf.mxu3  ;;  %2934 = vmatpush.bf16.msrb.mxu3 %v4653_v21  ;;  %v5126_v21 = vld [vmem:[#allocation13] sm:$0xff] }
 0x1d6   :  { %v2319_v20 = vadd.f32 %v2318_v32, %v2305_v28  ;;  %3088 = vmatpush.bf16.msra.mxu0 %v5130_v59  ;;  %v5155_v59 = vld [vmem:[#allocation16 + $0x28] sm:$0xff] }
 0x1d8   :  { %v2439_v35 = vmax.f32 %v2319_v20, 0.0  ;;  %2935 = vmatpush.bf16.msrb.mxu3 %v4645_v27 }
 0x1da   :  { %v2443_v56 = vpack.c.bf16 %v2439_v35, %v2435_v34  ;;  %3089 = vmatpush.bf16.msra.mxu0 %v5129_v48  ;;  %v5154_v48 = vld [vmem:[#allocation16 + $0x20] sm:$0xff] }
 0x1dc   :  { %2871 = vmatmul.bf16.vlgmr.msra.gmra.mxu2 %v2443_v56  ;;  %2936 = vmatpush.bf16.msrb.mxu3 %v4637_v37 }
 0x1de   :  { %3090 = vmatpush.bf16.msra.mxu0 %v5128_v51 }
 0x1df   :  { %v2330_v23 = vpop.f32.mrf.mxu0 }
 0x1e0   :  { %v2331_v6 = vadd.f32 %v2330_v23, %v700_v0  ;;  %2937 = vmatpush.bf16.msrb.mxu3 %v4629_v24  ;;  %v5140_v23 = vld [vmem:[#allocation13 + $0x70] sm:$0xff] }
 0x1e1   :  { %v2344_v11 = vpop.f32.mrf.mxu1  ;;  %3100 = vmatpush.bf16.msra.mxu1 %v5140_v23  ;;  %v5181_v23 = vld [vmem:[%s5727_s8] ss:$0 sm:$0xff] }
 0x1e2   :  { %v2345_v33 = vadd.f32 %v2344_v11, %v2331_v6  ;;  %3091 = vmatpush.bf16.msra.mxu0 %v5127_v55  ;;  %v5136_v11 = vld [vmem:[#allocation13 + $0x50] sm:$0xff] }
 0x1e4   :  { %2938 = vmatpush.bf16.msrb.mxu3 %v4621_v54 }
 0x1e5   :  { %3101 = vmatpush.bf16.msra.mxu1 %v5139_v17 }
 0x1e6   :  { %3092 = vmatpush.bf16.msra.mxu0 %v5126_v21 }
 0x1e7   :  { %v2332_v16 = vpop.f32.mrf.mxu0 }
 0x1e8   :  { %v2333_v8 = vadd.f32 %v2332_v16, %v700_v0  ;;  %2939 = vmatpush.bf16.msrb.mxu3 %v4613_v15  ;;  %v2509_v16 = vld [vmem:[%s5725_s6] sm:$0x3] }
 0x1e9   :  { %v2346_v9 = vpop.f32.mrf.mxu1  ;;  %3102 = vmatpush.bf16.msra.mxu1 %v5138_v57 }
 0x1ea   :  { %v2347_v18 = vadd.f32 %v2346_v9, %v2333_v8 }
 0x1eb   :  { %v2358_v31 = vpop.f32.mrf.mxu2 }
 0x1ec   :  { %2927 = vmatmul.bf16.vlgmr.msrb.gmra.mxu2 %v2443_v56  ;;  %v2372_v2 = vpop.f32.mrf.mxu3  ;;  %v2359_v36 = vadd.f32 %v2358_v31, %v2345_v33  ;;  %2940 = vmatpush.bf16.msrb.mxu3 %v4605_v61  ;;  %v5134_v31 = vld [vmem:[#allocation13 + $0x40] sm:$0xff] }
 0x1ed   :  { %3103 = vmatpush.bf16.msra.mxu1 %v5137_v58 }
 0x1ee   :  { %v2373_v60 = vadd.f32 %v2372_v2, %v2359_v36  ;;  %v2511_v2 = vperm.slane %v2509_v16, 0 }
 0x1f1   :  { %3104 = vmatpush.bf16.msra.mxu1 %v5136_v11 }
 0x1f3   :  { %v2360_v10 = vpop.f32.mrf.mxu2 }
 0x1f4   :  { %v2374_v53 = vpop.f32.mrf.mxu3  ;;  %v2361_v14 = vadd.f32 %v2360_v10, %v2347_v18 }
 0x1f5   :  { %3105 = vmatpush.bf16.msra.mxu1 %v5135_v63 }
 0x1f6   :  { %v2375_v28 = vadd.f32 %v2374_v53, %v2361_v14  ;;  %v2512_v53 = vperm.slane %v2509_v16, 1  ;;  %v5152_v16 = vld [vmem:[#allocation16 + $0x10] sm:$0xff] }
 0x1f9   :  { %3106 = vmatpush.bf16.msra.mxu1 %v5134_v31  ;;  %v5151_v31 = vld [vmem:[#allocation16 + $0x8] sm:$0xff] }
 0x1ff   :  { %v2386_v26 = vpop.f32.mrf.mxu0 }
 0x200   :  { %v2387_v52 = vadd.f32 %v2386_v26, %v2373_v60 }
 0x201   :  { %v2400_v44 = vpop.f32.mrf.mxu1 }
 0x202   :  { %v2401_v32 = vadd.f32 %v2400_v44, %v2387_v52 }
 0x207   :  { %v2388_v1 = vpop.f32.mrf.mxu0 }
 0x208   :  { %v2389_v20 = vadd.f32 %v2388_v1, %v2375_v28 }
 0x209   :  { %v2402_v35 = vpop.f32.mrf.mxu1 }
 0x20a   :  { %v2403_v38 = vadd.f32 %v2402_v35, %v2389_v20 }
 0x20b   :  { %v2414_v50 = vpop.f32.mrf.mxu2 }
 0x20c   :  { %v2428_v29 = vpop.f32.mrf.mxu3  ;;  %v2415_v34 = vadd.f32 %v2414_v50, %v2401_v32 }
 0x20e   :  { %v2429_v39 = vadd.f32 %v2428_v29, %v2415_v34 }
 0x210   :  { %v2436_v42 = vmax.f32 %v2429_v39, 0.0  ;;  %v5149_v39 = vld [vmem:[#allocation14 + $0x38] sm:$0xff] }
 0x211   :  { %3184 = vmatpush.bf16.msra.mxu2 %v5149_v39 }
 0x213   :  { %v2416_v30 = vpop.f32.mrf.mxu2 }
 0x214   :  { %v2417_v56 = vadd.f32 %v2416_v30, %v2403_v38  ;;  %v2430_v40 = vpop.f32.mrf.mxu3 }
 0x216   :  { %v2431_v41 = vadd.f32 %v2430_v40, %v2417_v56  ;;  %v5148_v56 = vld [vmem:[#allocation14 + $0x30] sm:$0xff]  ;;  %v5147_v40 = vld [vmem:[#allocation14 + $0x28] sm:$0xff] }
 0x217   :  { %3185 = vmatpush.bf16.msra.mxu2 %v5148_v56 }
 0x218   :  { %v2440_v43 = vmax.f32 %v2431_v41, 0.0  ;;  %v5146_v41 = vld [vmem:[#allocation14 + $0x20] sm:$0xff] }
 0x21a   :  { %v2444_v45 = vpack.c.bf16 %v2440_v43, %v2436_v42  ;;  %v5145_v42 = vld [vmem:[#allocation14 + $0x18] sm:$0xff]  ;;  %v5144_v43 = vld [vmem:[#allocation14 + $0x10] sm:$0xff] }
 0x21b   :  { %3186 = vmatpush.bf16.msra.mxu2 %v5147_v40 }
 0x21c   :  { %2885 = vmatmul.bf16.vlgmr.msra.gmra.mxu3 %v2444_v45 }
 0x21d   :  { %3269 = vmatpush.bf16.msra.mxu3 %v5157_v47 }
 0x21f   :  { %v2844_v27 = vpop.f32.mrf.mxu0  ;;  %v2858_v37 = vpop.f32.mrf.mxu1  ;;  %3187 = vmatpush.bf16.msra.mxu2 %v5146_v41 }
 0x220   :  { %v2845_v24 = vadd.f32 %v2844_v27, %v2511_v2 }
 0x221   :  { %3270 = vmatpush.bf16.msra.mxu3 %v5156_v7 }
 0x222   :  { %v2859_v6 = vadd.f32 %v2858_v37, %v2845_v24  ;;  %v5153_v37 = vld [vmem:[#allocation16 + $0x18] sm:$0xff] }
 0x223   :  { %3188 = vmatpush.bf16.msra.mxu2 %v5145_v42 }
 0x225   :  { %3271 = vmatpush.bf16.msra.mxu3 %v5155_v59 }
 0x227   :  { %v2846_v0 = vpop.f32.mrf.mxu0  ;;  %v2860_v5 = vpop.f32.mrf.mxu1  ;;  %3189 = vmatpush.bf16.msra.mxu2 %v5144_v43 }
 0x228   :  { %v2847_v25 = vadd.f32 %v2846_v0, %v2511_v2  ;;  %v5150_v0 = vld [vmem:[#allocation16] sm:$0xff] }
 0x229   :  { %3272 = vmatpush.bf16.msra.mxu3 %v5154_v48 }
 0x22a   :  { %v2861_v9 = vadd.f32 %v2860_v5, %v2847_v25 }
 0x22c   :  { %2941 = vmatmul.bf16.vlgmr.msrb.gmra.mxu3 %v2444_v45  ;;  %v5143_v45 = vld [vmem:[#allocation14 + $0x8] sm:$0xff] }
 0x22d   :  { %3190 = vmatpush.bf16.msra.mxu2 %v5143_v45  ;;  %3273 = vmatpush.bf16.msra.mxu3 %v5153_v37 }
 0x231   :  { %3191 = vmatpush.bf16.msra.mxu2 %v5142_v46  ;;  %3274 = vmatpush.bf16.msra.mxu3 %v5152_v16 }
 0x235   :  { %3275 = vmatpush.bf16.msra.mxu3 %v5151_v31 }
 0x239   :  { %3276 = vmatpush.bf16.msra.mxu3 %v5150_v0 }
 0x23f   :  { %v2900_v54 = vpop.f32.mrf.mxu0  ;;  %v2914_v13 = vpop.f32.mrf.mxu1 }
 0x240   :  { %v2901_v44 = vadd.f32 %v2900_v54, %v2512_v53 }
 0x242   :  { %v2915_v14 = vadd.f32 %v2914_v13, %v2901_v44 }
 0x247   :  { %v2902_v22 = vpop.f32.mrf.mxu0  ;;  %v2916_v52 = vpop.f32.mrf.mxu1 }
 0x248   :  { %v2903_v60 = vadd.f32 %v2902_v22, %v2512_v53 }
 0x24a   :  { %v2917_v50 = vadd.f32 %v2916_v52, %v2903_v60 }
 0x25f   :  { %v2872_v62 = vpop.f32.mrf.mxu2 }
 0x260   :  { %v2873_v26 = vadd.f32 %v2872_v62, %v2859_v6 }
 0x267   :  { %v2874_v3 = vpop.f32.mrf.mxu2 }
 0x268   :  { %v2875_v33 = vadd.f32 %v2874_v3, %v2861_v9  ;;  %v5182_v3 = vld [vmem:[%s5729_s10] ss:$0 sm:$0xff] }
 0x26f   :  { %v2928_v36 = vpop.f32.mrf.mxu2 }
 0x270   :  { %v2929_v28 = vadd.f32 %v2928_v36, %v2915_v14 }
 0x277   :  { %v2930_v1 = vpop.f32.mrf.mxu2 }
 0x278   :  { %v2931_v29 = vadd.f32 %v2930_v1, %v2917_v50 }
 0x29f   :  { %v2886_v4 = vpop.f32.mrf.mxu3 }
 0x2a0   :  { %v2887_v8 = vadd.f32 %v2886_v4, %v2873_v26  ;;  %v5183_v26 = vld [vmem:[%s5731_s12] ss:$0 sm:$0xff] }
 0x2a2   :  { %v2947_v15 = vmax.f32 %v2887_v8, 0.0 }
 0x2a7   :  { %v2888_v10 = vpop.f32.mrf.mxu3 }
 0x2a8   :  { %v2889_v12 = vadd.f32 %v2888_v10, %v2875_v33 }
 0x2aa   :  { %v2949_v18 = vmax.f32 %v2889_v12, 0.0 }
 0x2ac   :  { %v2951_v19 = vpack.c.bf16 %v2949_v18, %v2947_v15 }
 0x2ae   :  { %3093 = vmatmul.bf16.vlgmr.msra.gmra.mxu0 %v2951_v19 }
 0x2af   :  { %v2942_v61 = vpop.f32.mrf.mxu3 }
 0x2b0   :  { %v2943_v32 = vadd.f32 %v2942_v61, %v2929_v28 }
 0x2b2   :  { %v2948_v35 = vmax.f32 %v2943_v32, 0.0 }
 0x2b7   :  { %v2944_v20 = vpop.f32.mrf.mxu3 }
 0x2b8   :  { %v2945_v34 = vadd.f32 %v2944_v20, %v2931_v29 }
 0x2ba   :  { %v2950_v38 = vmax.f32 %v2945_v34, 0.0 }
 0x2bc   :  { %v2952_v30 = vpack.c.bf16 %v2950_v38, %v2948_v35 }
 0x2be   :  { %3107 = vmatmul.bf16.vlgmr.msra.gmra.mxu1 %v2952_v30 }
 0x32b   :  { %v3094_v49 = vpop.f32.mrf.mxu0 }
 0x32c   :  { %v3095_v17 = vadd.f32 %v5181_v23, %v3094_v49 }
 0x333   :  { %v3096_v55 = vpop.f32.mrf.mxu0 }
 0x334   :  { %v3097_v21 = vadd.f32 %v5181_v23, %v3096_v55 }
 0x33b   :  { %v3108_v51 = vpop.f32.mrf.mxu1 }
 0x33c   :  { %v3109_v57 = vadd.f32 %v3108_v51, %v3095_v17 }
 0x33e   :  { %v3113_v11 = vmax.f32 %v3109_v57, 0.0 }
 0x343   :  { %v3110_v58 = vpop.f32.mrf.mxu1 }
 0x344   :  { %v3111_v27 = vadd.f32 %v3110_v58, %v3097_v21 }
 0x346   :  { %v3114_v62 = vmax.f32 %v3111_v27, 0.0 }
 0x348   :  { %v3115_v63 = vpack.c.bf16 %v3114_v62, %v3113_v11 }
 0x34a   :  { %3192 = vmatmul.bf16.vlgmr.msra.gmra.mxu2 %v3115_v63 }
 0x3cd   :  { %v3193_v2 = vpop.f32.mrf.mxu2 }
 0x3ce   :  { %v3194_v4 = vadd.f32 %v5182_v3, %v3193_v2 }
 0x3d0   :  { %v3198_v25 = vmax.f32 %v3194_v4, 0.0 }
 0x3d5   :  { %v3195_v24 = vpop.f32.mrf.mxu2 }
 0x3d6   :  { %v3196_v5 = vadd.f32 %v5182_v3, %v3195_v24 }
 0x3d8   :  { %v3199_v6 = vmax.f32 %v3196_v5, 0.0 }
 0x3da   :  { %v3200_v54 = vpack.c.bf16 %v3199_v6, %v3198_v25 }
 0x3dc   :  { %3277 = vmatmul.bf16.vlgmr.msra.gmra.mxu3 %v3200_v54 }
 0x45f   :  { %v3278_v9 = vpop.f32.mrf.mxu3 }
 0x460   :  { %v3279_v8 = vadd.f32 %v5183_v26, %v3278_v9 }
 0x467   :  { %v3280_v33 = vpop.f32.mrf.mxu3 }
 0x468   :  { %v3281_v10 = vadd.f32 %v5183_v26, %v3280_v33 }
 0x46a   :  { %v5161_v12 = vpack.c.bf16 %v3281_v10, %v3279_v8 }
 0x46c   :  { %5162 = vst [vmem:[#allocation17] sm:$0xff] %v5161_v12  }
 0x46d   :  { %3299 = dma.vmem_to_hbm [thread:$0]  %s3292_s22, 128, %s3294_s24, [#allocation4], %s5446_s5, %s5446_s5, %s5447_s18  }
 0x46e   :  { %5434 = dma.done.wait [#allocation4], 128  }
 0x46f   :  { %5435 = vsyncadd [#allocation4], 4294967168 }
 0x470   :  { %3304 = vsyncpa [#allocation3], 1 }
 0x471   :  { %3305 = vsyncpa [#allocation6], 1 }
 0x472   :  { %3306 = vsyncpa [#allocation9], 1 }
 0x473   :  { %3307 = vsyncpa [#allocation12], 1 }
 0x474   :  { %3308 = vsyncpa [#allocation15], 1 }
 0x475   :  { %3309 = vsyncpa [#allocation4], 1 }

</bundles_post_ra>
